<compile_context>
chip_gen: v7x
topology: tpu7x:2x2x1
jax: 0.10.0
libtpu: 0.0.40
codegen_flags: <defaults>
</compile_context>

<pallas_src>
import math
from functools import partial

import jax
import jax.numpy as jnp
import numpy as np
from jax import lax
from jax.experimental import pallas as pl
from jax.experimental.pallas import tpu as pltpu

# ---- model hyper-parameters (match the PyTorch module) --------------------
VOCAB_SIZE = 62 + 1          # len(string.ascii_letters + string.digits) + 1
PAD_IDX = VOCAB_SIZE - 1
V_PAD = 128                  # vocab padded to a full lane width for the store
EMB_DIM = 16
HIDDEN_DIM = 32              # 4H = 128 -> lane-aligned gate matmul, 8H = 256
BATCH = 2
SEQ = 8


# ---------------------------------------------------------------------------
# Pallas kernel: fused encoder LSTM + decoder LSTM + output Linear.
#   x_ref       : [T*B, E]   time-major embedded tokens (row = (t, b))
#   wih_cat_ref : [E, 8H]    [W_ih_enc | W_ih_dec] (transposed, concatenated)
#   b_cat_ref   : [1, 8H]    [b_enc | b_dec] (b_ih + b_hh fused)
#   whh_e_ref   : [H, 4H]    encoder W_hh (transposed)
#   whh_d_ref   : [H, 4H]    decoder W_hh (transposed)
#   wfc_ref     : [H, Vp]    fc weight (transposed, zero-padded to Vp=128)
#   bfc_ref     : [1, Vp]    fc bias   (zero-padded)
#   out_ref     : [T*B, Vp]  logits (padded)
# ---------------------------------------------------------------------------
def seq2seq_kernel(x_ref, wih_cat_ref, b_cat_ref, whh_e_ref, whh_d_ref,
                   wfc_ref, bfc_ref, out_ref, *, T, B, H):
    # Hoisted, loop-invariant weight loads (stay resident in vregs).
    whh_e = whh_e_ref[...]
    whh_d = whh_d_ref[...]
    wfc = wfc_ref[...]
    bfc = bfc_ref[...]

    # One MXU pass: input projections + biases for all T steps, both LSTMs.
    #   [T*B, E] @ [E, 8H] + [1, 8H]  ->  [T*B, 8H]
    gx = (jnp.dot(x_ref[...], wih_cat_ref[...],
                  preferred_element_type=jnp.float32)
          + b_cat_ref[...])

    def lstm_step(gx_t, h, c, whh):
        # Only the recurrent matmul sits on the serial dependence chain.
        gates = gx_t + jnp.dot(h, whh, preferred_element_type=jnp.float32)
        sg = jax.nn.sigmoid(gates)       # whole [B, 4H] vreg, one EUP chain
        th = jnp.tanh(gates)             # whole [B, 4H] vreg, one EUP chain
        i = sg[:, 0 * H:1 * H]
        f = sg[:, 1 * H:2 * H]
        g = th[:, 2 * H:3 * H]
        o = sg[:, 3 * H:4 * H]
        c_new = f * c + i * g
        h_new = o * jnp.tanh(c_new)
        return h_new, c_new

    h = jnp.zeros((B, H), jnp.float32)
    c = jnp.zeros((B, H), jnp.float32)

    # ---- encoder: fully unrolled, only the final (h, c) is kept -----------
    for t in range(T):
        gx_t = gx[t * B:(t + 1) * B, 0:4 * H]
        h, c = lstm_step(gx_t, h, c, whh_e)

    # ---- decoder, seeded with encoder final state; collect hidden states --
    hs = []
    for t in range(T):
        gx_t = gx[t * B:(t + 1) * B, 4 * H:8 * H]
        h, c = lstm_step(gx_t, h, c, whh_d)
        hs.append(h)

    # ---- batched output Linear: one matmul + one lane-dense store ---------
    h_all = jnp.concatenate(hs, axis=0)                     # [T*B, H]
    out_ref[...] = (jnp.dot(h_all, wfc,
                            preferred_element_type=jnp.float32) + bfc)


def seq2seq_forward(tokens, kparams):
    """tokens: int32 [B, T].  Returns logits float32 [B, T, VOCAB_SIZE]."""
    B, T = tokens.shape
    H = HIDDEN_DIM

    # Time-major embedding gather directly into the kernel layout [T*B, E].
    x_flat = jnp.take(kparams["embedding"], tokens.T.reshape(-1), axis=0)

    out_flat = pl.pallas_call(
        partial(seq2seq_kernel, T=T, B=B, H=H),
        out_shape=jax.ShapeDtypeStruct((T * B, V_PAD), jnp.float32),
        in_specs=[pl.BlockSpec(memory_space=pltpu.MemorySpace.VMEM)] * 7,
        out_specs=pl.BlockSpec(memory_space=pltpu.MemorySpace.VMEM),
    )(x_flat,
      kparams["wih_cat"], kparams["b_cat"],
      kparams["whh_e_t"], kparams["whh_d_t"],
      kparams["wfc_t_pad"], kparams["bfc_pad"])

    logits = out_flat.reshape(T, B, V_PAD)[:, :, :VOCAB_SIZE]   # drop pad cols
    return jnp.swapaxes(logits, 0, 1)                           # [B, T, V]


# ---------------------------------------------------------------------------
# Deterministic parameter init (shapes per nn.Embedding / nn.LSTM / nn.Linear)
# ---------------------------------------------------------------------------
def init_params(key):
    V, E, H = VOCAB_SIZE, EMB_DIM, HIDDEN_DIM
    ks = jax.random.split(key, 12)
    k = 1.0 / math.sqrt(H)

    def u(kk, shape, scale):
        return jax.random.uniform(kk, shape, jnp.float32, -scale, scale)

    embedding = jax.random.normal(ks[0], (V, E), jnp.float32)
    embedding = embedding.at[PAD_IDX].set(0.0)        # padding_idx row is zero

    params = {
        "embedding": embedding,
        # encoder LSTM (PyTorch: W_ih [4H,E], W_hh [4H,H], b_ih/b_hh [4H])
        "wih_e": u(ks[1], (4 * H, E), k),
        "whh_e": u(ks[2], (4 * H, H), k),
        "b_ih_e": u(ks[3], (4 * H,), k),
        "b_hh_e": u(ks[4], (4 * H,), k),
        # decoder LSTM
        "wih_d": u(ks[5], (4 * H, E), k),
        "whh_d": u(ks[6], (4 * H, H), k),
        "b_ih_d": u(ks[7], (4 * H,), k),
        "b_hh_d": u(ks[8], (4 * H,), k),
        # fc: Linear(H, V)
        "wfc": u(ks[9], (V, H), k),
        "bfc": u(ks[10], (V,), k),
    }
    return params


def prepare_kernel_params(p):
    """Offline layout prep: transpose / concatenate / pad for the kernel."""
    V, H = VOCAB_SIZE, HIDDEN_DIM
    b_e = p["b_ih_e"] + p["b_hh_e"]
    b_d = p["b_ih_d"] + p["b_hh_d"]
    wfc_t = p["wfc"].T                                        # [H, V]
    return {
        "embedding": p["embedding"],
        "wih_cat": jnp.concatenate([p["wih_e"].T, p["wih_d"].T], axis=1),  # [E, 8H]
        "b_cat": jnp.concatenate([b_e, b_d])[None, :],                     # [1, 8H]
        "whh_e_t": p["whh_e"].T,                                           # [H, 4H]
        "whh_d_t": p["whh_d"].T,                                           # [H, 4H]
        "wfc_t_pad": jnp.pad(wfc_t, ((0, 0), (0, V_PAD - V))),             # [H, 128]
        "bfc_pad": jnp.pad(p["bfc"], (0, V_PAD - V))[None, :],             # [1, 128]
    }


# ---------------------------------------------------------------------------
# Pure-JAX reference for a correctness check
# ---------------------------------------------------------------------------
def seq2seq_reference(tokens, p):
    embedded = jnp.take(p["embedding"], tokens, axis=0)       # [B, T, E]
    B = tokens.shape[0]

    def run_lstm(x_bte, h0, c0, wih, whh, b_ih, b_hh):
        wih_t, whh_t, b = wih.T, whh.T, b_ih + b_hh

        def step(carry, x_t):
            h, c = carry
            gates = x_t @ wih_t + h @ whh_t + b
            i, f, g, o = jnp.split(gates, 4, axis=-1)
            i = jax.nn.sigmoid(i)
            f = jax.nn.sigmoid(f)
            g = jnp.tanh(g)
            o = jax.nn.sigmoid(o)
            c = f * c + i * g
            h = o * jnp.tanh(c)
            return (h, c), h

        (h, c), hs = lax.scan(step, (h0, c0), jnp.swapaxes(x_bte, 0, 1))
        return jnp.swapaxes(hs, 0, 1), (h, c)

    h0 = jnp.zeros((B, HIDDEN_DIM), jnp.float32)
    c0 = jnp.zeros((B, HIDDEN_DIM), jnp.float32)
    _, (h, c) = run_lstm(embedded, h0, c0,
                         p["wih_e"], p["whh_e"], p["b_ih_e"], p["b_hh_e"])
    # decoder consumes the same source embeddings (matches the PyTorch forward)
    dec_out, _ = run_lstm(embedded, h, c,
                          p["wih_d"], p["whh_d"], p["b_ih_d"], p["b_hh_d"])
    return dec_out @ p["wfc"].T + p["bfc"]


if __name__ == "__main__":
    key = jax.random.PRNGKey(0)
    k_tok, k_param = jax.random.split(key)

    tokens = jax.random.randint(k_tok, (BATCH, SEQ), 0, VOCAB_SIZE,
                                dtype=jnp.int32)
    params = init_params(k_param)
    kparams = prepare_kernel_params(params)

    logits = jax.jit(seq2seq_forward)(tokens, kparams)
    jax.block_until_ready(logits)

    ref = seq2seq_reference(tokens, params)
    np.testing.assert_allclose(np.asarray(logits), np.asarray(ref),
                               rtol=1e-2, atol=1e-2)
    assert logits.shape == (BATCH, SEQ, VOCAB_SIZE)
    print("KERNEL_OK")
</pallas_src>

<mosaic_0001>
module attributes {stable_mosaic.version = 11 : i64} {
  func.func @seq2seq_kernel(%arg0: memref<16x16xf32, #tpu.memory_space<vmem>>, %arg1: memref<16x256xf32, #tpu.memory_space<vmem>>, %arg2: memref<1x256xf32, #tpu.memory_space<vmem>>, %arg3: memref<32x128xf32, #tpu.memory_space<vmem>>, %arg4: memref<32x128xf32, #tpu.memory_space<vmem>>, %arg5: memref<32x128xf32, #tpu.memory_space<vmem>>, %arg6: memref<1x128xf32, #tpu.memory_space<vmem>>, %arg7: memref<16x128xf32, #tpu.memory_space<vmem>>) attributes {dimension_semantics = [], scalar_prefetch = 0 : i64, scratch_operands = 0 : i64, tpu.core_type = #tpu.core_type<tc>} {
    %c0 = arith.constant 0 : index
    %c0_0 = arith.constant 0 : index
    %0 = vector.load %arg3[%c0, %c0_0] : memref<32x128xf32, #tpu.memory_space<vmem>>, vector<32x128xf32>
    %c0_1 = arith.constant 0 : index
    %c0_2 = arith.constant 0 : index
    %1 = vector.load %arg4[%c0_1, %c0_2] : memref<32x128xf32, #tpu.memory_space<vmem>>, vector<32x128xf32>
    %c0_3 = arith.constant 0 : index
    %c0_4 = arith.constant 0 : index
    %2 = vector.load %arg5[%c0_3, %c0_4] : memref<32x128xf32, #tpu.memory_space<vmem>>, vector<32x128xf32>
    %c0_5 = arith.constant 0 : index
    %c0_6 = arith.constant 0 : index
    %3 = vector.load %arg6[%c0_5, %c0_6] : memref<1x128xf32, #tpu.memory_space<vmem>>, vector<1x128xf32>
    %c0_7 = arith.constant 0 : index
    %c0_8 = arith.constant 0 : index
    %4 = vector.load %arg0[%c0_7, %c0_8] : memref<16x16xf32, #tpu.memory_space<vmem>>, vector<16x16xf32>
    %c0_9 = arith.constant 0 : index
    %c0_10 = arith.constant 0 : index
    %5 = vector.load %arg1[%c0_9, %c0_10] : memref<16x256xf32, #tpu.memory_space<vmem>>, vector<16x256xf32>
    %cst = arith.constant dense<0.000000e+00> : vector<16x256xf32>
    %6 = tpu.matmul %4, %5, %cst {dimension_numbers = #tpu.dot_dimension_numbers<[1], [0], [0], [1], [0, 0, 1, 1], [], []>} : vector<16x16xf32>, vector<16x256xf32>, vector<16x256xf32> -> vector<16x256xf32>
    %c0_11 = arith.constant 0 : index
    %c0_12 = arith.constant 0 : index
    %7 = vector.load %arg2[%c0_11, %c0_12] : memref<1x256xf32, #tpu.memory_space<vmem>>, vector<1x256xf32>
    %8 = vector.broadcast %7 : vector<1x256xf32> to vector<16x256xf32>
    %9 = arith.addf %6, %8 : vector<16x256xf32>
    %cst_13 = arith.constant 0.000000e+00 : f32
    %10 = vector.broadcast %cst_13 : f32 to vector<2x32xf32>
    %cst_14 = arith.constant 0.000000e+00 : f32
    %11 = vector.broadcast %cst_14 : f32 to vector<2x32xf32>
    %12 = vector.extract_strided_slice %9 {offsets = [0, 0], sizes = [2, 128], strides = [1, 1]} : vector<16x256xf32> to vector<2x128xf32>
    %cst_15 = arith.constant dense<0.000000e+00> : vector<2x128xf32>
    %13 = tpu.matmul %10, %0, %cst_15 {dimension_numbers = #tpu.dot_dimension_numbers<[1], [0], [0], [1], [0, 0, 1, 1], [], []>} : vector<2x32xf32>, vector<32x128xf32>, vector<2x128xf32> -> vector<2x128xf32>
    %14 = arith.addf %12, %13 : vector<2x128xf32>
    %15 = arith.negf %14 : vector<2x128xf32>
    %16 = math.exp %15 : vector<2x128xf32>
    %cst_16 = arith.constant 1.000000e+00 : f32
    %17 = vector.broadcast %cst_16 : f32 to vector<2x128xf32>
    %18 = arith.addf %17, %16 : vector<2x128xf32>
    %19 = arith.divf %17, %18 : vector<2x128xf32>
    %20 = math.tanh %14 : vector<2x128xf32>
    %21 = vector.extract_strided_slice %19 {offsets = [0, 0], sizes = [2, 32], strides = [1, 1]} : vector<2x128xf32> to vector<2x32xf32>
    %22 = vector.extract_strided_slice %19 {offsets = [0, 32], sizes = [2, 32], strides = [1, 1]} : vector<2x128xf32> to vector<2x32xf32>
    %23 = vector.extract_strided_slice %20 {offsets = [0, 64], sizes = [2, 32], strides = [1, 1]} : vector<2x128xf32> to vector<2x32xf32>
    %24 = vector.extract_strided_slice %19 {offsets = [0, 96], sizes = [2, 32], strides = [1, 1]} : vector<2x128xf32> to vector<2x32xf32>
    %25 = arith.mulf %22, %11 : vector<2x32xf32>
    %26 = arith.mulf %21, %23 : vector<2x32xf32>
    %27 = arith.addf %25, %26 : vector<2x32xf32>
    %28 = math.tanh %27 : vector<2x32xf32>
    %29 = arith.mulf %24, %28 : vector<2x32xf32>
    %30 = vector.extract_strided_slice %9 {offsets = [2, 0], sizes = [2, 128], strides = [1, 1]} : vector<16x256xf32> to vector<2x128xf32>
    %cst_17 = arith.constant dense<0.000000e+00> : vector<2x128xf32>
    %31 = tpu.matmul %29, %0, %cst_17 {dimension_numbers = #tpu.dot_dimension_numbers<[1], [0], [0], [1], [0, 0, 1, 1], [], []>} : vector<2x32xf32>, vector<32x128xf32>, vector<2x128xf32> -> vector<2x128xf32>
    %32 = arith.addf %30, %31 : vector<2x128xf32>
    %33 = arith.negf %32 : vector<2x128xf32>
    %34 = math.exp %33 : vector<2x128xf32>
    %cst_18 = arith.constant 1.000000e+00 : f32
    %35 = vector.broadcast %cst_18 : f32 to vector<2x128xf32>
    %36 = arith.addf %35, %34 : vector<2x128xf32>
    %37 = arith.divf %35, %36 : vector<2x128xf32>
    %38 = math.tanh %32 : vector<2x128xf32>
    %39 = vector.extract_strided_slice %37 {offsets = [0, 0], sizes = [2, 32], strides = [1, 1]} : vector<2x128xf32> to vector<2x32xf32>
    %40 = vector.extract_strided_slice %37 {offsets = [0, 32], sizes = [2, 32], strides = [1, 1]} : vector<2x128xf32> to vector<2x32xf32>
    %41 = vector.extract_strided_slice %38 {offsets = [0, 64], sizes = [2, 32], strides = [1, 1]} : vector<2x128xf32> to vector<2x32xf32>
    %42 = vector.extract_strided_slice %37 {offsets = [0, 96], sizes = [2, 32], strides = [1, 1]} : vector<2x128xf32> to vector<2x32xf32>
    %43 = arith.mulf %40, %27 : vector<2x32xf32>
    %44 = arith.mulf %39, %41 : vector<2x32xf32>
    %45 = arith.addf %43, %44 : vector<2x32xf32>
    %46 = math.tanh %45 : vector<2x32xf32>
    %47 = arith.mulf %42, %46 : vector<2x32xf32>
    %48 = vector.extract_strided_slice %9 {offsets = [4, 0], sizes = [2, 128], strides = [1, 1]} : vector<16x256xf32> to vector<2x128xf32>
    %cst_19 = arith.constant dense<0.000000e+00> : vector<2x128xf32>
    %49 = tpu.matmul %47, %0, %cst_19 {dimension_numbers = #tpu.dot_dimension_numbers<[1], [0], [0], [1], [0, 0, 1, 1], [], []>} : vector<2x32xf32>, vector<32x128xf32>, vector<2x128xf32> -> vector<2x128xf32>
    %50 = arith.addf %48, %49 : vector<2x128xf32>
    %51 = arith.negf %50 : vector<2x128xf32>
    %52 = math.exp %51 : vector<2x128xf32>
    %cst_20 = arith.constant 1.000000e+00 : f32
    %53 = vector.broadcast %cst_20 : f32 to vector<2x128xf32>
    %54 = arith.addf %53, %52 : vector<2x128xf32>
    %55 = arith.divf %53, %54 : vector<2x128xf32>
    %56 = math.tanh %50 : vector<2x128xf32>
    %57 = vector.extract_strided_slice %55 {offsets = [0, 0], sizes = [2, 32], strides = [1, 1]} : vector<2x128xf32> to vector<2x32xf32>
    %58 = vector.extract_strided_slice %55 {offsets = [0, 32], sizes = [2, 32], strides = [1, 1]} : vector<2x128xf32> to vector<2x32xf32>
    %59 = vector.extract_strided_slice %56 {offsets = [0, 64], sizes = [2, 32], strides = [1, 1]} : vector<2x128xf32> to vector<2x32xf32>
    %60 = vector.extract_strided_slice %55 {offsets = [0, 96], sizes = [2, 32], strides = [1, 1]} : vector<2x128xf32> to vector<2x32xf32>
    %61 = arith.mulf %58, %45 : vector<2x32xf32>
    %62 = arith.mulf %57, %59 : vector<2x32xf32>
    %63 = arith.addf %61, %62 : vector<2x32xf32>
    %64 = math.tanh %63 : vector<2x32xf32>
    %65 = arith.mulf %60, %64 : vector<2x32xf32>
    %66 = vector.extract_strided_slice %9 {offsets = [6, 0], sizes = [2, 128], strides = [1, 1]} : vector<16x256xf32> to vector<2x128xf32>
    %cst_21 = arith.constant dense<0.000000e+00> : vector<2x128xf32>
    %67 = tpu.matmul %65, %0, %cst_21 {dimension_numbers = #tpu.dot_dimension_numbers<[1], [0], [0], [1], [0, 0, 1, 1], [], []>} : vector<2x32xf32>, vector<32x128xf32>, vector<2x128xf32> -> vector<2x128xf32>
    %68 = arith.addf %66, %67 : vector<2x128xf32>
    %69 = arith.negf %68 : vector<2x128xf32>
    %70 = math.exp %69 : vector<2x128xf32>
    %cst_22 = arith.constant 1.000000e+00 : f32
    %71 = vector.broadcast %cst_22 : f32 to vector<2x128xf32>
    %72 = arith.addf %71, %70 : vector<2x128xf32>
    %73 = arith.divf %71, %72 : vector<2x128xf32>
    %74 = math.tanh %68 : vector<2x128xf32>
    %75 = vector.extract_strided_slice %73 {offsets = [0, 0], sizes = [2, 32], strides = [1, 1]} : vector<2x128xf32> to vector<2x32xf32>
    %76 = vector.extract_strided_slice %73 {offsets = [0, 32], sizes = [2, 32], strides = [1, 1]} : vector<2x128xf32> to vector<2x32xf32>
    %77 = vector.extract_strided_slice %74 {offsets = [0, 64], sizes = [2, 32], strides = [1, 1]} : vector<2x128xf32> to vector<2x32xf32>
    %78 = vector.extract_strided_slice %73 {offsets = [0, 96], sizes = [2, 32], strides = [1, 1]} : vector<2x128xf32> to vector<2x32xf32>
    %79 = arith.mulf %76, %63 : vector<2x32xf32>
    %80 = arith.mulf %75, %77 : vector<2x32xf32>
    %81 = arith.addf %79, %80 : vector<2x32xf32>
    %82 = math.tanh %81 : vector<2x32xf32>
    %83 = arith.mulf %78, %82 : vector<2x32xf32>
    %84 = vector.extract_strided_slice %9 {offsets = [8, 0], sizes = [2, 128], strides = [1, 1]} : vector<16x256xf32> to vector<2x128xf32>
    %cst_23 = arith.constant dense<0.000000e+00> : vector<2x128xf32>
    %85 = tpu.matmul %83, %0, %cst_23 {dimension_numbers = #tpu.dot_dimension_numbers<[1], [0], [0], [1], [0, 0, 1, 1], [], []>} : vector<2x32xf32>, vector<32x128xf32>, vector<2x128xf32> -> vector<2x128xf32>
    %86 = arith.addf %84, %85 : vector<2x128xf32>
    %87 = arith.negf %86 : vector<2x128xf32>
    %88 = math.exp %87 : vector<2x128xf32>
    %cst_24 = arith.constant 1.000000e+00 : f32
    %89 = vector.broadcast %cst_24 : f32 to vector<2x128xf32>
    %90 = arith.addf %89, %88 : vector<2x128xf32>
    %91 = arith.divf %89, %90 : vector<2x128xf32>
    %92 = math.tanh %86 : vector<2x128xf32>
    %93 = vector.extract_strided_slice %91 {offsets = [0, 0], sizes = [2, 32], strides = [1, 1]} : vector<2x128xf32> to vector<2x32xf32>
    %94 = vector.extract_strided_slice %91 {offsets = [0, 32], sizes = [2, 32], strides = [1, 1]} : vector<2x128xf32> to vector<2x32xf32>
    %95 = vector.extract_strided_slice %92 {offsets = [0, 64], sizes = [2, 32], strides = [1, 1]} : vector<2x128xf32> to vector<2x32xf32>
    %96 = vector.extract_strided_slice %91 {offsets = [0, 96], sizes = [2, 32], strides = [1, 1]} : vector<2x128xf32> to vector<2x32xf32>
    %97 = arith.mulf %94, %81 : vector<2x32xf32>
    %98 = arith.mulf %93, %95 : vector<2x32xf32>
    %99 = arith.addf %97, %98 : vector<2x32xf32>
    %100 = math.tanh %99 : vector<2x32xf32>
    %101 = arith.mulf %96, %100 : vector<2x32xf32>
    %102 = vector.extract_strided_slice %9 {offsets = [10, 0], sizes = [2, 128], strides = [1, 1]} : vector<16x256xf32> to vector<2x128xf32>
    %cst_25 = arith.constant dense<0.000000e+00> : vector<2x128xf32>
    %103 = tpu.matmul %101, %0, %cst_25 {dimension_numbers = #tpu.dot_dimension_numbers<[1], [0], [0], [1], [0, 0, 1, 1], [], []>} : vector<2x32xf32>, vector<32x128xf32>, vector<2x128xf32> -> vector<2x128xf32>
    %104 = arith.addf %102, %103 : vector<2x128xf32>
    %105 = arith.negf %104 : vector<2x128xf32>
    %106 = math.exp %105 : vector<2x128xf32>
    %cst_26 = arith.constant 1.000000e+00 : f32
    %107 = vector.broadcast %cst_26 : f32 to vector<2x128xf32>
    %108 = arith.addf %107, %106 : vector<2x128xf32>
    %109 = arith.divf %107, %108 : vector<2x128xf32>
    %110 = math.tanh %104 : vector<2x128xf32>
    %111 = vector.extract_strided_slice %109 {offsets = [0, 0], sizes = [2, 32], strides = [1, 1]} : vector<2x128xf32> to vector<2x32xf32>
    %112 = vector.extract_strided_slice %109 {offsets = [0, 32], sizes = [2, 32], strides = [1, 1]} : vector<2x128xf32> to vector<2x32xf32>
    %113 = vector.extract_strided_slice %110 {offsets = [0, 64], sizes = [2, 32], strides = [1, 1]} : vector<2x128xf32> to vector<2x32xf32>
    %114 = vector.extract_strided_slice %109 {offsets = [0, 96], sizes = [2, 32], strides = [1, 1]} : vector<2x128xf32> to vector<2x32xf32>
    %115 = arith.mulf %112, %99 : vector<2x32xf32>
    %116 = arith.mulf %111, %113 : vector<2x32xf32>
    %117 = arith.addf %115, %116 : vector<2x32xf32>
    %118 = math.tanh %117 : vector<2x32xf32>
    %119 = arith.mulf %114, %118 : vector<2x32xf32>
    %120 = vector.extract_strided_slice %9 {offsets = [12, 0], sizes = [2, 128], strides = [1, 1]} : vector<16x256xf32> to vector<2x128xf32>
    %cst_27 = arith.constant dense<0.000000e+00> : vector<2x128xf32>
    %121 = tpu.matmul %119, %0, %cst_27 {dimension_numbers = #tpu.dot_dimension_numbers<[1], [0], [0], [1], [0, 0, 1, 1], [], []>} : vector<2x32xf32>, vector<32x128xf32>, vector<2x128xf32> -> vector<2x128xf32>
    %122 = arith.addf %120, %121 : vector<2x128xf32>
    %123 = arith.negf %122 : vector<2x128xf32>
    %124 = math.exp %123 : vector<2x128xf32>
    %cst_28 = arith.constant 1.000000e+00 : f32
    %125 = vector.broadcast %cst_28 : f32 to vector<2x128xf32>
    %126 = arith.addf %125, %124 : vector<2x128xf32>
    %127 = arith.divf %125, %126 : vector<2x128xf32>
    %128 = math.tanh %122 : vector<2x128xf32>
    %129 = vector.extract_strided_slice %127 {offsets = [0, 0], sizes = [2, 32], strides = [1, 1]} : vector<2x128xf32> to vector<2x32xf32>
    %130 = vector.extract_strided_slice %127 {offsets = [0, 32], sizes = [2, 32], strides = [1, 1]} : vector<2x128xf32> to vector<2x32xf32>
    %131 = vector.extract_strided_slice %128 {offsets = [0, 64], sizes = [2, 32], strides = [1, 1]} : vector<2x128xf32> to vector<2x32xf32>
    %132 = vector.extract_strided_slice %127 {offsets = [0, 96], sizes = [2, 32], strides = [1, 1]} : vector<2x128xf32> to vector<2x32xf32>
    %133 = arith.mulf %130, %117 : vector<2x32xf32>
    %134 = arith.mulf %129, %131 : vector<2x32xf32>
    %135 = arith.addf %133, %134 : vector<2x32xf32>
    %136 = math.tanh %135 : vector<2x32xf32>
    %137 = arith.mulf %132, %136 : vector<2x32xf32>
    %138 = vector.extract_strided_slice %9 {offsets = [14, 0], sizes = [2, 128], strides = [1, 1]} : vector<16x256xf32> to vector<2x128xf32>
    %cst_29 = arith.constant dense<0.000000e+00> : vector<2x128xf32>
    %139 = tpu.matmul %137, %0, %cst_29 {dimension_numbers = #tpu.dot_dimension_numbers<[1], [0], [0], [1], [0, 0, 1, 1], [], []>} : vector<2x32xf32>, vector<32x128xf32>, vector<2x128xf32> -> vector<2x128xf32>
    %140 = arith.addf %138, %139 : vector<2x128xf32>
    %141 = arith.negf %140 : vector<2x128xf32>
    %142 = math.exp %141 : vector<2x128xf32>
    %cst_30 = arith.constant 1.000000e+00 : f32
    %143 = vector.broadcast %cst_30 : f32 to vector<2x128xf32>
    %144 = arith.addf %143, %142 : vector<2x128xf32>
    %145 = arith.divf %143, %144 : vector<2x128xf32>
    %146 = math.tanh %140 : vector<2x128xf32>
    %147 = vector.extract_strided_slice %145 {offsets = [0, 0], sizes = [2, 32], strides = [1, 1]} : vector<2x128xf32> to vector<2x32xf32>
    %148 = vector.extract_strided_slice %145 {offsets = [0, 32], sizes = [2, 32], strides = [1, 1]} : vector<2x128xf32> to vector<2x32xf32>
    %149 = vector.extract_strided_slice %146 {offsets = [0, 64], sizes = [2, 32], strides = [1, 1]} : vector<2x128xf32> to vector<2x32xf32>
    %150 = vector.extract_strided_slice %145 {offsets = [0, 96], sizes = [2, 32], strides = [1, 1]} : vector<2x128xf32> to vector<2x32xf32>
    %151 = arith.mulf %148, %135 : vector<2x32xf32>
    %152 = arith.mulf %147, %149 : vector<2x32xf32>
    %153 = arith.addf %151, %152 : vector<2x32xf32>
    %154 = math.tanh %153 : vector<2x32xf32>
    %155 = arith.mulf %150, %154 : vector<2x32xf32>
    %156 = vector.extract_strided_slice %9 {offsets = [0, 128], sizes = [2, 128], strides = [1, 1]} : vector<16x256xf32> to vector<2x128xf32>
    %cst_31 = arith.constant dense<0.000000e+00> : vector<2x128xf32>
    %157 = tpu.matmul %155, %1, %cst_31 {dimension_numbers = #tpu.dot_dimension_numbers<[1], [0], [0], [1], [0, 0, 1, 1], [], []>} : vector<2x32xf32>, vector<32x128xf32>, vector<2x128xf32> -> vector<2x128xf32>
    %158 = arith.addf %156, %157 : vector<2x128xf32>
    %159 = arith.negf %158 : vector<2x128xf32>
    %160 = math.exp %159 : vector<2x128xf32>
    %cst_32 = arith.constant 1.000000e+00 : f32
    %161 = vector.broadcast %cst_32 : f32 to vector<2x128xf32>
    %162 = arith.addf %161, %160 : vector<2x128xf32>
    %163 = arith.divf %161, %162 : vector<2x128xf32>
    %164 = math.tanh %158 : vector<2x128xf32>
    %165 = vector.extract_strided_slice %163 {offsets = [0, 0], sizes = [2, 32], strides = [1, 1]} : vector<2x128xf32> to vector<2x32xf32>
    %166 = vector.extract_strided_slice %163 {offsets = [0, 32], sizes = [2, 32], strides = [1, 1]} : vector<2x128xf32> to vector<2x32xf32>
    %167 = vector.extract_strided_slice %164 {offsets = [0, 64], sizes = [2, 32], strides = [1, 1]} : vector<2x128xf32> to vector<2x32xf32>
    %168 = vector.extract_strided_slice %163 {offsets = [0, 96], sizes = [2, 32], strides = [1, 1]} : vector<2x128xf32> to vector<2x32xf32>
    %169 = arith.mulf %166, %153 : vector<2x32xf32>
    %170 = arith.mulf %165, %167 : vector<2x32xf32>
    %171 = arith.addf %169, %170 : vector<2x32xf32>
    %172 = math.tanh %171 : vector<2x32xf32>
    %173 = arith.mulf %168, %172 : vector<2x32xf32>
    %174 = vector.extract_strided_slice %9 {offsets = [2, 128], sizes = [2, 128], strides = [1, 1]} : vector<16x256xf32> to vector<2x128xf32>
    %cst_33 = arith.constant dense<0.000000e+00> : vector<2x128xf32>
    %175 = tpu.matmul %173, %1, %cst_33 {dimension_numbers = #tpu.dot_dimension_numbers<[1], [0], [0], [1], [0, 0, 1, 1], [], []>} : vector<2x32xf32>, vector<32x128xf32>, vector<2x128xf32> -> vector<2x128xf32>
    %176 = arith.addf %174, %175 : vector<2x128xf32>
    %177 = arith.negf %176 : vector<2x128xf32>
    %178 = math.exp %177 : vector<2x128xf32>
    %cst_34 = arith.constant 1.000000e+00 : f32
    %179 = vector.broadcast %cst_34 : f32 to vector<2x128xf32>
    %180 = arith.addf %179, %178 : vector<2x128xf32>
    %181 = arith.divf %179, %180 : vector<2x128xf32>
    %182 = math.tanh %176 : vector<2x128xf32>
    %183 = vector.extract_strided_slice %181 {offsets = [0, 0], sizes = [2, 32], strides = [1, 1]} : vector<2x128xf32> to vector<2x32xf32>
    %184 = vector.extract_strided_slice %181 {offsets = [0, 32], sizes = [2, 32], strides = [1, 1]} : vector<2x128xf32> to vector<2x32xf32>
    %185 = vector.extract_strided_slice %182 {offsets = [0, 64], sizes = [2, 32], strides = [1, 1]} : vector<2x128xf32> to vector<2x32xf32>
    %186 = vector.extract_strided_slice %181 {offsets = [0, 96], sizes = [2, 32], strides = [1, 1]} : vector<2x128xf32> to vector<2x32xf32>
    %187 = arith.mulf %184, %171 : vector<2x32xf32>
    %188 = arith.mulf %183, %185 : vector<2x32xf32>
    %189 = arith.addf %187, %188 : vector<2x32xf32>
    %190 = math.tanh %189 : vector<2x32xf32>
    %191 = arith.mulf %186, %190 : vector<2x32xf32>
    %192 = vector.extract_strided_slice %9 {offsets = [4, 128], sizes = [2, 128], strides = [1, 1]} : vector<16x256xf32> to vector<2x128xf32>
    %cst_35 = arith.constant dense<0.000000e+00> : vector<2x128xf32>
    %193 = tpu.matmul %191, %1, %cst_35 {dimension_numbers = #tpu.dot_dimension_numbers<[1], [0], [0], [1], [0, 0, 1, 1], [], []>} : vector<2x32xf32>, vector<32x128xf32>, vector<2x128xf32> -> vector<2x128xf32>
    %194 = arith.addf %192, %193 : vector<2x128xf32>
    %195 = arith.negf %194 : vector<2x128xf32>
    %196 = math.exp %195 : vector<2x128xf32>
    %cst_36 = arith.constant 1.000000e+00 : f32
    %197 = vector.broadcast %cst_36 : f32 to vector<2x128xf32>
    %198 = arith.addf %197, %196 : vector<2x128xf32>
    %199 = arith.divf %197, %198 : vector<2x128xf32>
    %200 = math.tanh %194 : vector<2x128xf32>
    %201 = vector.extract_strided_slice %199 {offsets = [0, 0], sizes = [2, 32], strides = [1, 1]} : vector<2x128xf32> to vector<2x32xf32>
    %202 = vector.extract_strided_slice %199 {offsets = [0, 32], sizes = [2, 32], strides = [1, 1]} : vector<2x128xf32> to vector<2x32xf32>
    %203 = vector.extract_strided_slice %200 {offsets = [0, 64], sizes = [2, 32], strides = [1, 1]} : vector<2x128xf32> to vector<2x32xf32>
    %204 = vector.extract_strided_slice %199 {offsets = [0, 96], sizes = [2, 32], strides = [1, 1]} : vector<2x128xf32> to vector<2x32xf32>
    %205 = arith.mulf %202, %189 : vector<2x32xf32>
    %206 = arith.mulf %201, %203 : vector<2x32xf32>
    %207 = arith.addf %205, %206 : vector<2x32xf32>
    %208 = math.tanh %207 : vector<2x32xf32>
    %209 = arith.mulf %204, %208 : vector<2x32xf32>
    %210 = vector.extract_strided_slice %9 {offsets = [6, 128], sizes = [2, 128], strides = [1, 1]} : vector<16x256xf32> to vector<2x128xf32>
    %cst_37 = arith.constant dense<0.000000e+00> : vector<2x128xf32>
    %211 = tpu.matmul %209, %1, %cst_37 {dimension_numbers = #tpu.dot_dimension_numbers<[1], [0], [0], [1], [0, 0, 1, 1], [], []>} : vector<2x32xf32>, vector<32x128xf32>, vector<2x128xf32> -> vector<2x128xf32>
    %212 = arith.addf %210, %211 : vector<2x128xf32>
    %213 = arith.negf %212 : vector<2x128xf32>
    %214 = math.exp %213 : vector<2x128xf32>
    %cst_38 = arith.constant 1.000000e+00 : f32
    %215 = vector.broadcast %cst_38 : f32 to vector<2x128xf32>
    %216 = arith.addf %215, %214 : vector<2x128xf32>
    %217 = arith.divf %215, %216 : vector<2x128xf32>
    %218 = math.tanh %212 : vector<2x128xf32>
    %219 = vector.extract_strided_slice %217 {offsets = [0, 0], sizes = [2, 32], strides = [1, 1]} : vector<2x128xf32> to vector<2x32xf32>
    %220 = vector.extract_strided_slice %217 {offsets = [0, 32], sizes = [2, 32], strides = [1, 1]} : vector<2x128xf32> to vector<2x32xf32>
    %221 = vector.extract_strided_slice %218 {offsets = [0, 64], sizes = [2, 32], strides = [1, 1]} : vector<2x128xf32> to vector<2x32xf32>
    %222 = vector.extract_strided_slice %217 {offsets = [0, 96], sizes = [2, 32], strides = [1, 1]} : vector<2x128xf32> to vector<2x32xf32>
    %223 = arith.mulf %220, %207 : vector<2x32xf32>
    %224 = arith.mulf %219, %221 : vector<2x32xf32>
    %225 = arith.addf %223, %224 : vector<2x32xf32>
    %226 = math.tanh %225 : vector<2x32xf32>
    %227 = arith.mulf %222, %226 : vector<2x32xf32>
    %228 = vector.extract_strided_slice %9 {offsets = [8, 128], sizes = [2, 128], strides = [1, 1]} : vector<16x256xf32> to vector<2x128xf32>
    %cst_39 = arith.constant dense<0.000000e+00> : vector<2x128xf32>
    %229 = tpu.matmul %227, %1, %cst_39 {dimension_numbers = #tpu.dot_dimension_numbers<[1], [0], [0], [1], [0, 0, 1, 1], [], []>} : vector<2x32xf32>, vector<32x128xf32>, vector<2x128xf32> -> vector<2x128xf32>
    %230 = arith.addf %228, %229 : vector<2x128xf32>
    %231 = arith.negf %230 : vector<2x128xf32>
    %232 = math.exp %231 : vector<2x128xf32>
    %cst_40 = arith.constant 1.000000e+00 : f32
    %233 = vector.broadcast %cst_40 : f32 to vector<2x128xf32>
    %234 = arith.addf %233, %232 : vector<2x128xf32>
    %235 = arith.divf %233, %234 : vector<2x128xf32>
    %236 = math.tanh %230 : vector<2x128xf32>
    %237 = vector.extract_strided_slice %235 {offsets = [0, 0], sizes = [2, 32], strides = [1, 1]} : vector<2x128xf32> to vector<2x32xf32>
    %238 = vector.extract_strided_slice %235 {offsets = [0, 32], sizes = [2, 32], strides = [1, 1]} : vector<2x128xf32> to vector<2x32xf32>
    %239 = vector.extract_strided_slice %236 {offsets = [0, 64], sizes = [2, 32], strides = [1, 1]} : vector<2x128xf32> to vector<2x32xf32>
    %240 = vector.extract_strided_slice %235 {offsets = [0, 96], sizes = [2, 32], strides = [1, 1]} : vector<2x128xf32> to vector<2x32xf32>
    %241 = arith.mulf %238, %225 : vector<2x32xf32>
    %242 = arith.mulf %237, %239 : vector<2x32xf32>
    %243 = arith.addf %241, %242 : vector<2x32xf32>
    %244 = math.tanh %243 : vector<2x32xf32>
    %245 = arith.mulf %240, %244 : vector<2x32xf32>
    %246 = vector.extract_strided_slice %9 {offsets = [10, 128], sizes = [2, 128], strides = [1, 1]} : vector<16x256xf32> to vector<2x128xf32>
    %cst_41 = arith.constant dense<0.000000e+00> : vector<2x128xf32>
    %247 = tpu.matmul %245, %1, %cst_41 {dimension_numbers = #tpu.dot_dimension_numbers<[1], [0], [0], [1], [0, 0, 1, 1], [], []>} : vector<2x32xf32>, vector<32x128xf32>, vector<2x128xf32> -> vector<2x128xf32>
    %248 = arith.addf %246, %247 : vector<2x128xf32>
    %249 = arith.negf %248 : vector<2x128xf32>
    %250 = math.exp %249 : vector<2x128xf32>
    %cst_42 = arith.constant 1.000000e+00 : f32
    %251 = vector.broadcast %cst_42 : f32 to vector<2x128xf32>
    %252 = arith.addf %251, %250 : vector<2x128xf32>
    %253 = arith.divf %251, %252 : vector<2x128xf32>
    %254 = math.tanh %248 : vector<2x128xf32>
    %255 = vector.extract_strided_slice %253 {offsets = [0, 0], sizes = [2, 32], strides = [1, 1]} : vector<2x128xf32> to vector<2x32xf32>
    %256 = vector.extract_strided_slice %253 {offsets = [0, 32], sizes = [2, 32], strides = [1, 1]} : vector<2x128xf32> to vector<2x32xf32>
    %257 = vector.extract_strided_slice %254 {offsets = [0, 64], sizes = [2, 32], strides = [1, 1]} : vector<2x128xf32> to vector<2x32xf32>
    %258 = vector.extract_strided_slice %253 {offsets = [0, 96], sizes = [2, 32], strides = [1, 1]} : vector<2x128xf32> to vector<2x32xf32>
    %259 = arith.mulf %256, %243 : vector<2x32xf32>
    %260 = arith.mulf %255, %257 : vector<2x32xf32>
    %261 = arith.addf %259, %260 : vector<2x32xf32>
    %262 = math.tanh %261 : vector<2x32xf32>
    %263 = arith.mulf %258, %262 : vector<2x32xf32>
    %264 = vector.extract_strided_slice %9 {offsets = [12, 128], sizes = [2, 128], strides = [1, 1]} : vector<16x256xf32> to vector<2x128xf32>
    %cst_43 = arith.constant dense<0.000000e+00> : vector<2x128xf32>
    %265 = tpu.matmul %263, %1, %cst_43 {dimension_numbers = #tpu.dot_dimension_numbers<[1], [0], [0], [1], [0, 0, 1, 1], [], []>} : vector<2x32xf32>, vector<32x128xf32>, vector<2x128xf32> -> vector<2x128xf32>
    %266 = arith.addf %264, %265 : vector<2x128xf32>
    %267 = arith.negf %266 : vector<2x128xf32>
    %268 = math.exp %267 : vector<2x128xf32>
    %cst_44 = arith.constant 1.000000e+00 : f32
    %269 = vector.broadcast %cst_44 : f32 to vector<2x128xf32>
    %270 = arith.addf %269, %268 : vector<2x128xf32>
    %271 = arith.divf %269, %270 : vector<2x128xf32>
    %272 = math.tanh %266 : vector<2x128xf32>
    %273 = vector.extract_strided_slice %271 {offsets = [0, 0], sizes = [2, 32], strides = [1, 1]} : vector<2x128xf32> to vector<2x32xf32>
    %274 = vector.extract_strided_slice %271 {offsets = [0, 32], sizes = [2, 32], strides = [1, 1]} : vector<2x128xf32> to vector<2x32xf32>
    %275 = vector.extract_strided_slice %272 {offsets = [0, 64], sizes = [2, 32], strides = [1, 1]} : vector<2x128xf32> to vector<2x32xf32>
    %276 = vector.extract_strided_slice %271 {offsets = [0, 96], sizes = [2, 32], strides = [1, 1]} : vector<2x128xf32> to vector<2x32xf32>
    %277 = arith.mulf %274, %261 : vector<2x32xf32>
    %278 = arith.mulf %273, %275 : vector<2x32xf32>
    %279 = arith.addf %277, %278 : vector<2x32xf32>
    %280 = math.tanh %279 : vector<2x32xf32>
    %281 = arith.mulf %276, %280 : vector<2x32xf32>
    %282 = vector.extract_strided_slice %9 {offsets = [14, 128], sizes = [2, 128], strides = [1, 1]} : vector<16x256xf32> to vector<2x128xf32>
    %cst_45 = arith.constant dense<0.000000e+00> : vector<2x128xf32>
    %283 = tpu.matmul %281, %1, %cst_45 {dimension_numbers = #tpu.dot_dimension_numbers<[1], [0], [0], [1], [0, 0, 1, 1], [], []>} : vector<2x32xf32>, vector<32x128xf32>, vector<2x128xf32> -> vector<2x128xf32>
    %284 = arith.addf %282, %283 : vector<2x128xf32>
    %285 = arith.negf %284 : vector<2x128xf32>
    %286 = math.exp %285 : vector<2x128xf32>
    %cst_46 = arith.constant 1.000000e+00 : f32
    %287 = vector.broadcast %cst_46 : f32 to vector<2x128xf32>
    %288 = arith.addf %287, %286 : vector<2x128xf32>
    %289 = arith.divf %287, %288 : vector<2x128xf32>
    %290 = math.tanh %284 : vector<2x128xf32>
    %291 = vector.extract_strided_slice %289 {offsets = [0, 0], sizes = [2, 32], strides = [1, 1]} : vector<2x128xf32> to vector<2x32xf32>
    %292 = vector.extract_strided_slice %289 {offsets = [0, 32], sizes = [2, 32], strides = [1, 1]} : vector<2x128xf32> to vector<2x32xf32>
    %293 = vector.extract_strided_slice %290 {offsets = [0, 64], sizes = [2, 32], strides = [1, 1]} : vector<2x128xf32> to vector<2x32xf32>
    %294 = vector.extract_strided_slice %289 {offsets = [0, 96], sizes = [2, 32], strides = [1, 1]} : vector<2x128xf32> to vector<2x32xf32>
    %295 = arith.mulf %292, %279 : vector<2x32xf32>
    %296 = arith.mulf %291, %293 : vector<2x32xf32>
    %297 = arith.addf %295, %296 : vector<2x32xf32>
    %298 = math.tanh %297 : vector<2x32xf32>
    %299 = arith.mulf %294, %298 : vector<2x32xf32>
    %300 = tpu.concatenate %173, %191, %209, %227, %245, %263, %281, %299 in 0 : vector<2x32xf32>, vector<2x32xf32>, vector<2x32xf32>, vector<2x32xf32>, vector<2x32xf32>, vector<2x32xf32>, vector<2x32xf32>, vector<2x32xf32> -> vector<16x32xf32>
    %cst_47 = arith.constant dense<0.000000e+00> : vector<16x128xf32>
    %301 = tpu.matmul %300, %2, %cst_47 {dimension_numbers = #tpu.dot_dimension_numbers<[1], [0], [0], [1], [0, 0, 1, 1], [], []>} : vector<16x32xf32>, vector<32x128xf32>, vector<16x128xf32> -> vector<16x128xf32>
    %302 = vector.broadcast %3 : vector<1x128xf32> to vector<16x128xf32>
    %303 = arith.addf %301, %302 : vector<16x128xf32>
    %c0_48 = arith.constant 0 : index
    %c0_49 = arith.constant 0 : index
    %304 = vector.load %arg7[%c0_48, %c0_49] : memref<16x128xf32, #tpu.memory_space<vmem>>, vector<16x128xf32>
    tpu.vector_store %arg7[%c0_48, %c0_49], %303 {strides = array<i32>} : memref<16x128xf32, #tpu.memory_space<vmem>>, vector<16x128xf32>,
    return
  }
}

</mosaic_0001>

<bundles_post_ra>
// kernel: seq2seq_forward.1
= control target key start
LH: loop header
LB: loop body
LE: loop exit
PB: predicated region body
PF: predicated region fallthrough
CT: control target
= control target key end

     0   :  { %v2488_v0 = vmov 0.0|0.0   ;;  %v2489_v4 = vmov 0.0   ;;  %vm2490_vm0 = vmmov 0   ;;  %vm57_vm1 = vcmask 130048   ;;  %s2491_s19 = smov 64   ;;  %s2856_s1 = inlined_call_operand.vmem [shape: f32[16,256], index: 1, kind: input, shape index: {}]   ;;  %s2857_s3 = inlined_call_operand.vmem [shape: f32[32,128], index: 3, kind: input, shape index: {}]   ;;  %s2858_s0 = inlined_call_operand.vmem [shape: f32[16,16], index: 0, kind: input, shape index: {}]   ;;  %s2859_s2 = inlined_call_operand.vmem [shape: f32[1,256], index: 2, kind: input, shape index: {}]   ;;  %s2860_s4 = inlined_call_operand.vmem [shape: f32[32,128], index: 4, kind: input, shape index: {}]   ;;  %s2861_s5 = inlined_call_operand.vmem [shape: f32[32,128], index: 5, kind: input, shape index: {}]   ;;  %s2862_s6 = inlined_call_operand.vmem [shape: f32[1,128], index: 6, kind: input, shape index: {}]   ;;  %s2863_s7 = inlined_call_operand.vmem [shape: f32[16,128], index: 7, kind: output, shape index: {}]  }
   0x1   :  { %2251 = vmatprep.subr.bf16.mxu1 %v2488_v0  ;;  %v42_v1 = vld [vmem:[%s2856_s1 + $0x8] sm:$0xff]  ;;  %v44_v2 = vld [vmem:[%s2856_s1 + $0x18] sm:$0xff]  ;;  %v26_v3 = vld [vmem:[%s2857_s3] sm:$0xff]  ;;  %128 = vmatprep.mubr.f32.mxu0 %v2489_v4  ;;  %v47_v15 = vlaneseq  ;;  %vm141_vm2 = vcmask 261120   ;;  %vm1832_vm3 = vcmask 1041408   ;;  %vm1834_vm4 = vcmask 1043456  }
   0x2   :  { %v2247_v5 = vpack.c.bf16 %v44_v2, %v42_v1  ;;  %v27_v6 = vld [vmem:[%s2857_s3 + $0x8] sm:$0xff]  ;;  %v41_v7 = vld [vmem:[%s2856_s1] sm:$0xff]  ;;  %v43_v8 = vld [vmem:[%s2856_s1 + $0x10] sm:$0xff]  ;;  %2068 = vmatprep.mubr.msk.f32.mxu1 %vm2490_vm0, %v2489_v4  ;;  %vm1836_vm5 = vcmask 1045504  }
   0x3   :  { %v2555_v9 = vpack.c.bf16 %v27_v6, %v26_v3  ;;  %v2249_v10 = vpack.c.bf16 %v43_v8, %v41_v7  ;;  %v28_v11 = vld [vmem:[%s2857_s3 + $0x10] sm:$0xff]  ;;  %v29_v12 = vld [vmem:[%s2857_s3 + $0x18] sm:$0xff]  ;;  %v39_v13 = vld [vmem:[%s2858_s0] sm:$0xff]  ;;  %v2586_v16 = vshrl.u32 %v47_v15, 7 }
   0x4   :  { %2248 = vmatprep.subr.bf16.mxu0 %v2247_v5  ;;  %v2567_v14 = vpack.c.bf16 %v29_v12, %v28_v11  ;;  %v2592_v18 = vld [vmem:[%s2859_s2] sm:$0x3]  ;;  %s2492_s2 = smov 32   ;;  %v40_v36 = vld [vmem:[%s2858_s0 + $0x8] sm:$0xff] }
   0x5   :  { %2253 = vmatpush3.bf16.msra.mxu1 %v2555_v9  ;;  %2250 = vmatpush1.bf16.msra.mxu0 %v2249_v10  ;;  %v49_v17 = vsub.s32 0, %v2586_v16 }
   0x6   :  { %2254 = vmatprep.subr.bf16.mxu1 %v2488_v0  ;;  %2257 = vmatprep.subr.bf16.mxu0 %v2488_v0 }
   0x7   :  { %v2595_v19 = vrot.slane %v2592_v18, %v49_v17 }
   0x8   :  { %1938 = vmatmul.mubr.msk.f32.vlgmr.msra.gmra.mrb[0].mxu0 %vm57_vm1, %v39_v13 }
   0x9   :  { %2256 = vmatpush3.bf16.msra.mxu1 %v2567_v14  ;;  %2259 = vmatpush3.bf16.msra.mxu0 %v2555_v9 }
   0xa   :  { %134 = vmatprep.mubr.f32.mxu0 %v2489_v4  ;;  %2260 = vmatprep.subr.bf16.mxu0 %v2488_v0 }
   0xb   :  { %2263 = vmatprep.subr.bf16.mxu1 %v2488_v0 }
   0xc   :  { %2069 = vmatmul.mubr.f32.vlgmr.msra.gmra.mrb[0].mxu1 %v2489_v4  ;;  %1939 = vmatmul.mubr.msk.f32.gmra.mrb[2].mxu0 %vm57_vm1, %v40_v36 }
   0xd   :  { %2262 = vmatpush3.bf16.msra.mxu0 %v2567_v14  ;;  %2265 = vmatpush3.bf16.msra.mxu1 %v2555_v9 }
   0xe   :  { %2266 = vmatprep.subr.bf16.mxu1 %v2488_v0  ;;  %2090 = vmatprep.mubr.msk.f32.mxu1 %vm2490_vm0, %v2489_v4 }
   0xf   :  { %2269 = vmatprep.subr.bf16.mxu0 %v2488_v0  ;;  %2079 = vmatprep.mubr.msk.f32.mxu0 %vm2490_vm0, %v2489_v4 }
  0x11   :  { %2268 = vmatpush3.bf16.msra.mxu1 %v2567_v14 }
  0x12   :  { %2275 = vmatprep.subr.bf16.mxu1 %v2488_v0 }
  0xdb   :  { %v130_v20 = vpop.f32.mrb[0].mxu0 }
  0xdc   :  { %v2598_v21 = vadd.f32 %v130_v20, %v2595_v19  ;;  %v2600_v22 = vpop.f32.mrb[1].mxu0 }
  0xdf   :  { %v211_v23 = vpop.f32.mrb[0].mxu1  ;;  %v2613_v40 = vpop.f32.mrb[2].mxu0 }
  0xe0   :  { %v215_v24 = vadd.f32 %v211_v23, %v2598_v21  ;;  %v2070_v25 = vpop.f32.mrb[1].mxu1  ;;  %v2615_v41 = vpop.f32.mrb[3].mxu0 }
  0xe2   :  { %2360 = vtanh.f32 %v215_v24  ;;  %v1940_v27 = vmul.f32 -1.442695, %v215_v24 }
  0xe4   :  { %2362 = vpow2.f32 %v1940_v27 }
  0xec   :  { %v2361_v26 = vpop.eup %2360 }
  0xed   :  { %225 = vrot.lane.b32.xlu0 %v2361_v26, %s2491_s19 }
  0xee   :  { %v2363_v28 = vpop.eup %2362 }
  0xef   :  { %v219_v29 = vadd.f32 1.0, %v2363_v28 }
  0xf1   :  { %2364 = vrcp.f32 %v219_v29 }
  0xfb   :  { %v2365_v30 = vpop.eup %2364 }
  0xfc   :  { %v223_v33 = vmul.f32 0.0, %v2365_v30 }
 0x15f   :  { %v226_v31 = vpop.permute.xlu0 %225 }
 0x160   :  { %v228_v32 = vmul.f32 %v2365_v30, %v226_v31 }
 0x162   :  { %230 = vrot.lane.b32.xlu0 %v228_v32, %s2492_s2 }
 0x1d4   :  { %v231_v34 = vpop.permute.xlu0 %230 }
 0x1d5   :  { %v233_v35 = vadd.f32 %v231_v34, %v223_v33 }
 0x1d7   :  { %2366 = vtanh.f32 %v233_v35  ;;  %v327_v54 = vrot.slane %v233_v35, 6 }
 0x1e1   :  { %v2367_v37 = vpop.eup %2366 }
 0x1e2   :  { %236 = vrot.lane.b32.xlu1 %v2367_v37, %s2491_s19 }
 0x254   :  { %v237_v38 = vpop.permute.xlu1 %236 }
 0x255   :  { %v239_v39 = vmul.f32 %v2365_v30, %v237_v38 }
 0x257   :  { %241 = vrot.lane.b32.xlu1 %v239_v39, %s2492_s2 }
 0x2c9   :  { %v242_v42 = vpop.permute.xlu1 %241 }
 0x2ca   :  { %2080 = vmatmul.mubr.msk.f32.vlgmr.msra.gmra.mrb[4].mxu0 %vm141_vm2, %v242_v42 }
 0x2cb   :  { %2271 = vmatpush3.bf16.msra.mxu0 %v2555_v9  ;;  %2101 = vmatprep.mubr.msk.f32.mxu0 %vm2490_vm0, %v2489_v4 }
 0x2cc   :  { %2272 = vmatprep.subr.bf16.mxu0 %v2488_v0 }
 0x2cf   :  { %2274 = vmatpush3.bf16.msra.mxu0 %v2567_v14 }
 0x2d0   :  { %2281 = vmatprep.subr.bf16.mxu0 %v2488_v0 }
 0x39d   :  { %v311_v43 = vpop.f32.mrb[4].mxu0 }
 0x39e   :  { %v316_v44 = vrot.slane %v311_v43, 6  ;;  %v2081_v45 = vpop.f32.mrb[5].mxu0 }
 0x3a0   :  { %v318_v46 = vadd.f32 %v316_v44, %v2598_v21 }
 0x3a2   :  { %2368 = vtanh.f32 %v318_v46  ;;  %v1942_v48 = vmul.f32 -1.442695, %v318_v46 }
 0x3a4   :  { %2370 = vpow2.f32 %v1942_v48 }
 0x3ac   :  { %v2369_v47 = vpop.eup %2368 }
 0x3ad   :  { %331 = vrot.lane.b32.xlu0 %v2369_v47, %s2491_s19 }
 0x3ae   :  { %v2371_v49 = vpop.eup %2370 }
 0x3af   :  { %v322_v50 = vadd.f32 1.0, %v2371_v49  ;;  %v2662_v49 = vadd.f32 %v2613_v40, %v2595_v19 }
 0x3b1   :  { %2372 = vrcp.f32 %v322_v50 }
 0x3bb   :  { %v2373_v51 = vpop.eup %2372 }
 0x3bc   :  { %v329_v55 = vmul.f32 %v2373_v51, %v327_v54 }
 0x41f   :  { %v332_v52 = vpop.permute.xlu0 %331 }
 0x420   :  { %v334_v53 = vmul.f32 %v2373_v51, %v332_v52 }
 0x422   :  { %336 = vrot.lane.b32.xlu1 %v334_v53, %s2492_s2 }
 0x494   :  { %v337_v56 = vpop.permute.xlu1 %336 }
 0x495   :  { %v339_v57 = vadd.f32 %v337_v56, %v329_v55 }
 0x497   :  { %2374 = vtanh.f32 %v339_v57  ;;  %v434_v13 = vrot.slane %v339_v57, 6 }
 0x4a1   :  { %v2375_v58 = vpop.eup %2374 }
 0x4a2   :  { %342 = vrot.lane.b32.xlu0 %v2375_v58, %s2491_s19 }
 0x514   :  { %v343_v59 = vpop.permute.xlu0 %342 }
 0x515   :  { %v345_v60 = vmul.f32 %v2373_v51, %v343_v59 }
 0x517   :  { %v347_v61 = vrot.slane %v345_v60, 2 }
 0x519   :  { %348 = vrot.lane.b32.xlu1 %v347_v61, %s2492_s2 }
 0x58b   :  { %v349_v62 = vpop.permute.xlu1 %348 }
 0x58c   :  { %2091 = vmatmul.mubr.msk.f32.vlgmr.msra.gmra.mrb[2].mxu1 %vm141_vm2, %v349_v62 }
 0x58d   :  { %2277 = vmatpush3.bf16.msra.mxu1 %v2555_v9  ;;  %2112 = vmatprep.mubr.msk.f32.mxu1 %vm2490_vm0, %v2489_v4 }
 0x58e   :  { %2278 = vmatprep.subr.bf16.mxu1 %v2488_v0 }
 0x591   :  { %2280 = vmatpush3.bf16.msra.mxu1 %v2567_v14 }
 0x592   :  { %2287 = vmatprep.subr.bf16.mxu1 %v2488_v0 }
 0x65f   :  { %v418_v63 = vpop.f32.mrb[2].mxu1 }
 0x660   :  { %v423_v1 = vrot.slane %v418_v63, 4  ;;  %v2092_v2 = vpop.f32.mrb[3].mxu1 }
 0x662   :  { %v425_v3 = vadd.f32 %v423_v1, %v2598_v21 }
 0x664   :  { %2376 = vtanh.f32 %v425_v3  ;;  %v1944_v6 = vmul.f32 -1.442695, %v425_v3 }
 0x666   :  { %2378 = vpow2.f32 %v1944_v6 }
 0x66e   :  { %v2377_v5 = vpop.eup %2376 }
 0x66f   :  { %438 = vrot.lane.b32.xlu0 %v2377_v5, %s2491_s19 }
 0x670   :  { %v2379_v7 = vpop.eup %2378 }
 0x671   :  { %v429_v8 = vadd.f32 1.0, %v2379_v7 }
 0x673   :  { %2380 = vrcp.f32 %v429_v8 }
 0x67d   :  { %v2381_v10 = vpop.eup %2380 }
 0x67e   :  { %v436_v15 = vmul.f32 %v2381_v10, %v434_v13 }
 0x6e1   :  { %v439_v11 = vpop.permute.xlu0 %438 }
 0x6e2   :  { %v441_v12 = vmul.f32 %v2381_v10, %v439_v11 }
 0x6e4   :  { %443 = vrot.lane.b32.xlu1 %v441_v12, %s2492_s2 }
 0x756   :  { %v444_v17 = vpop.permute.xlu1 %443 }
 0x757   :  { %v446_v20 = vadd.f32 %v444_v17, %v436_v15 }
 0x759   :  { %2382 = vtanh.f32 %v446_v20  ;;  %v541_v39 = vrot.slane %v446_v20, 6 }
 0x763   :  { %v2383_v23 = vpop.eup %2382 }
 0x764   :  { %449 = vrot.lane.b32.xlu0 %v2383_v23, %s2491_s19 }
 0x7d6   :  { %v450_v24 = vpop.permute.xlu0 %449 }
 0x7d7   :  { %v452_v25 = vmul.f32 %v2381_v10, %v450_v24 }
 0x7d9   :  { %v454_v26 = vrot.slane %v452_v25, 4 }
 0x7db   :  { %455 = vrot.lane.b32.xlu1 %v454_v26, %s2492_s2 }
 0x84d   :  { %v456_v27 = vpop.permute.xlu1 %455 }
 0x84e   :  { %2102 = vmatmul.mubr.msk.f32.vlgmr.msra.gmra.mrb[6].mxu0 %vm141_vm2, %v456_v27 }
 0x84f   :  { %2283 = vmatpush3.bf16.msra.mxu0 %v2555_v9  ;;  %2123 = vmatprep.mubr.msk.f32.mxu0 %vm2490_vm0, %v2489_v4 }
 0x850   :  { %2284 = vmatprep.subr.bf16.mxu0 %v2488_v0 }
 0x853   :  { %2286 = vmatpush3.bf16.msra.mxu0 %v2567_v14 }
 0x854   :  { %2293 = vmatprep.subr.bf16.mxu0 %v2488_v0 }
 0x921   :  { %v525_v28 = vpop.f32.mrb[6].mxu0 }
 0x922   :  { %v530_v29 = vrot.slane %v525_v28, 2  ;;  %v2103_v30 = vpop.f32.mrb[7].mxu0 }
 0x924   :  { %v532_v31 = vadd.f32 %v530_v29, %v2598_v21 }
 0x926   :  { %2384 = vtanh.f32 %v532_v31  ;;  %v1946_v33 = vmul.f32 -1.442695, %v532_v31 }
 0x928   :  { %2386 = vpow2.f32 %v1946_v33 }
 0x930   :  { %v2385_v32 = vpop.eup %2384 }
 0x931   :  { %545 = vrot.lane.b32.xlu0 %v2385_v32, %s2491_s19 }
 0x932   :  { %v2387_v34 = vpop.eup %2386 }
 0x933   :  { %v536_v35 = vadd.f32 1.0, %v2387_v34 }
 0x935   :  { %2388 = vrcp.f32 %v536_v35 }
 0x93f   :  { %v2389_v36 = vpop.eup %2388 }
 0x940   :  { %v543_v42 = vmul.f32 %v2389_v36, %v541_v39 }
 0x9a3   :  { %v546_v37 = vpop.permute.xlu0 %545 }
 0x9a4   :  { %v548_v38 = vmul.f32 %v2389_v36, %v546_v37 }
 0x9a6   :  { %550 = vrot.lane.b32.xlu1 %v548_v38, %s2492_s2 }
 0xa18   :  { %v551_v43 = vpop.permute.xlu1 %550 }
 0xa19   :  { %v553_v44 = vadd.f32 %v551_v43, %v543_v42 }
 0xa1b   :  { %2390 = vtanh.f32 %v553_v44  ;;  %v645_v19 = vrot.slane %v553_v44, 6 }
 0xa25   :  { %v2391_v21 = vpop.eup %2390 }
 0xa26   :  { %556 = vrot.lane.b32.xlu0 %v2391_v21, %s2491_s19 }
 0xa98   :  { %v557_v45 = vpop.permute.xlu0 %556 }
 0xa99   :  { %v559_v46 = vmul.f32 %v2389_v36, %v557_v45 }
 0xa9b   :  { %v561_v47 = vrot.slane %v559_v46, 6 }
 0xa9d   :  { %562 = vrot.lane.b32.xlu1 %v561_v47, %s2492_s2 }
 0xb0f   :  { %v563_v48 = vpop.permute.xlu1 %562 }
 0xb10   :  { %2113 = vmatmul.mubr.msk.f32.vlgmr.msra.gmra.mrb[4].mxu1 %vm141_vm2, %v563_v48 }
 0xb11   :  { %2289 = vmatpush3.bf16.msra.mxu1 %v2555_v9  ;;  %2134 = vmatprep.mubr.msk.f32.mxu1 %vm2490_vm0, %v2489_v4 }
 0xb12   :  { %2290 = vmatprep.subr.bf16.mxu1 %v2488_v0 }
 0xb15   :  { %2292 = vmatpush3.bf16.msra.mxu1 %v2567_v14 }
 0xb16   :  { %2299 = vmatprep.subr.bf16.mxu1 %v2488_v0 }
 0xbe3   :  { %v632_v50 = vpop.f32.mrb[4].mxu1 }
 0xbe4   :  { %v636_v51 = vadd.f32 %v632_v50, %v2662_v49  ;;  %v2114_v52 = vpop.f32.mrb[5].mxu1 }
 0xbe6   :  { %2392 = vtanh.f32 %v636_v51  ;;  %v1948_v54 = vmul.f32 -1.442695, %v636_v51 }
 0xbe8   :  { %2394 = vpow2.f32 %v1948_v54 }
 0xbf0   :  { %v2393_v53 = vpop.eup %2392 }
 0xbf1   :  { %649 = vrot.lane.b32.xlu0 %v2393_v53, %s2491_s19 }
 0xbf2   :  { %v2395_v55 = vpop.eup %2394 }
 0xbf3   :  { %v640_v56 = vadd.f32 1.0, %v2395_v55 }
 0xbf5   :  { %2396 = vrcp.f32 %v640_v56 }
 0xbff   :  { %v2397_v57 = vpop.eup %2396 }
 0xc00   :  { %v647_v40 = vmul.f32 %v2397_v57, %v645_v19 }
 0xc63   :  { %v650_v58 = vpop.permute.xlu0 %649 }
 0xc64   :  { %v652_v59 = vmul.f32 %v2397_v57, %v650_v58 }
 0xc66   :  { %654 = vrot.lane.b32.xlu1 %v652_v59, %s2492_s2 }
 0xcd8   :  { %v655_v60 = vpop.permute.xlu1 %654 }
 0xcd9   :  { %v657_v61 = vadd.f32 %v655_v60, %v647_v40 }
 0xcdb   :  { %2398 = vtanh.f32 %v657_v61 }
 0xce5   :  { %v2399_v62 = vpop.eup %2398 }
 0xce6   :  { %660 = vrot.lane.b32.xlu0 %v2399_v62, %s2491_s19 }
 0xd58   :  { %v661_v63 = vpop.permute.xlu0 %660 }
 0xd59   :  { %v663_v1 = vmul.f32 %v2397_v57, %v661_v63 }
 0xd5b   :  { %665 = vrot.lane.b32.xlu1 %v663_v1, %s2492_s2  ;;  %v31_v1 = vld [vmem:[%s2860_s4 + $0x8] sm:$0xff] }
 0xdcd   :  { %v666_v2 = vpop.permute.xlu1 %665 }
 0xdce   :  { %2124 = vmatmul.mubr.msk.f32.vlgmr.msra.gmra.mrb[8].mxu0 %vm141_vm2, %v666_v2  ;;  %v32_v2 = vld [vmem:[%s2860_s4 + $0x10] sm:$0xff] }
 0xdcf   :  { %2295 = vmatpush3.bf16.msra.mxu0 %v2555_v9  ;;  %2145 = vmatprep.mubr.msk.f32.mxu0 %vm2490_vm0, %v2489_v4 }
 0xdd0   :  { %2296 = vmatprep.subr.bf16.mxu0 %v2488_v0 }
 0xdd3   :  { %2298 = vmatpush3.bf16.msra.mxu0 %v2567_v14  ;;  %v751_v14 = vrot.slane %v657_v61, 6 }
 0xdd4   :  { %2305 = vmatprep.subr.bf16.mxu0 %v2488_v0 }
 0xea1   :  { %v735_v3 = vpop.f32.mrb[8].mxu0 }
 0xea2   :  { %v740_v5 = vrot.slane %v735_v3, 6  ;;  %v2125_v6 = vpop.f32.mrb[9].mxu0 }
 0xea4   :  { %v742_v7 = vadd.f32 %v740_v5, %v2662_v49  ;;  %v33_v5 = vld [vmem:[%s2860_s4 + $0x18] sm:$0xff] }
 0xea5   :  { %v2710_v6 = vpack.c.bf16 %v33_v5, %v32_v2 }
 0xea6   :  { %2400 = vtanh.f32 %v742_v7  ;;  %v1950_v10 = vmul.f32 -1.442695, %v742_v7 }
 0xea8   :  { %2402 = vpow2.f32 %v1950_v10 }
 0xeb0   :  { %v2401_v8 = vpop.eup %2400 }
 0xeb1   :  { %755 = vrot.lane.b32.xlu0 %v2401_v8, %s2491_s19 }
 0xeb2   :  { %v2403_v9 = vpop.eup %2402 }
 0xeb3   :  { %v746_v11 = vadd.f32 1.0, %v2403_v9 }
 0xeb5   :  { %2404 = vrcp.f32 %v746_v11 }
 0xebf   :  { %v2405_v12 = vpop.eup %2404 }
 0xec0   :  { %v753_v17 = vmul.f32 %v2405_v12, %v751_v14 }
 0xf23   :  { %v756_v13 = vpop.permute.xlu0 %755 }
 0xf24   :  { %v758_v15 = vmul.f32 %v2405_v12, %v756_v13 }
 0xf26   :  { %760 = vrot.lane.b32.xlu1 %v758_v15, %s2492_s2 }
 0xf98   :  { %v761_v20 = vpop.permute.xlu1 %760 }
 0xf99   :  { %v763_v23 = vadd.f32 %v761_v20, %v753_v17 }
 0xf9b   :  { %2406 = vtanh.f32 %v763_v23  ;;  %v858_v42 = vrot.slane %v763_v23, 6 }
 0xfa5   :  { %v2407_v24 = vpop.eup %2406 }
 0xfa6   :  { %766 = vrot.lane.b32.xlu0 %v2407_v24, %s2491_s19 }
0x1018   :  { %v767_v25 = vpop.permute.xlu0 %766 }
0x1019   :  { %v769_v26 = vmul.f32 %v2405_v12, %v767_v25  ;;  %v53_v12 = vsub.s32 1, %v2586_v16 }
0x101b   :  { %v771_v27 = vrot.slane %v769_v26, 2  ;;  %v2730_v13 = vrot.slane %v2592_v18, %v53_v12 }
0x101d   :  { %772 = vrot.lane.b32.xlu1 %v771_v27, %s2492_s2  ;;  %v2734_v15 = vadd.f32 %v2600_v22, %v2730_v13 }
0x108f   :  { %v773_v28 = vpop.permute.xlu1 %772 }
0x1090   :  { %2135 = vmatmul.mubr.msk.f32.vlgmr.msra.gmra.mrb[6].mxu1 %vm141_vm2, %v773_v28 }
0x1091   :  { %2156 = vmatprep.mubr.msk.f32.mxu1 %vm2490_vm0, %v2489_v4 }
0x1163   :  { %v842_v29 = vpop.f32.mrb[6].mxu1 }
0x1164   :  { %v847_v30 = vrot.slane %v842_v29, 4  ;;  %v2136_v31 = vpop.f32.mrb[7].mxu1 }
0x1166   :  { %v849_v32 = vadd.f32 %v847_v30, %v2662_v49 }
0x1168   :  { %2408 = vtanh.f32 %v849_v32  ;;  %v1952_v34 = vmul.f32 -1.442695, %v849_v32 }
0x116a   :  { %2410 = vpow2.f32 %v1952_v34 }
0x1172   :  { %v2409_v33 = vpop.eup %2408 }
0x1173   :  { %862 = vrot.lane.b32.xlu0 %v2409_v33, %s2491_s19 }
0x1174   :  { %v2411_v35 = vpop.eup %2410 }
0x1175   :  { %v853_v36 = vadd.f32 1.0, %v2411_v35 }
0x1177   :  { %2412 = vrcp.f32 %v853_v36 }
0x1181   :  { %v2413_v37 = vpop.eup %2412 }
0x1182   :  { %v860_v43 = vmul.f32 %v2413_v37, %v858_v42 }
0x11e5   :  { %v863_v38 = vpop.permute.xlu0 %862 }
0x11e6   :  { %v865_v39 = vmul.f32 %v2413_v37, %v863_v38 }
0x11e8   :  { %867 = vrot.lane.b32.xlu1 %v865_v39, %s2492_s2 }
0x125a   :  { %v868_v44 = vpop.permute.xlu1 %867 }
0x125b   :  { %v870_v21 = vadd.f32 %v868_v44, %v860_v43 }
0x125d   :  { %2414 = vtanh.f32 %v870_v21  ;;  %v965_v60 = vrot.slane %v870_v21, 6 }
0x1267   :  { %v2415_v45 = vpop.eup %2414 }
0x1268   :  { %873 = vrot.lane.b32.xlu0 %v2415_v45, %s2491_s19 }
0x12da   :  { %v874_v46 = vpop.permute.xlu0 %873 }
0x12db   :  { %v876_v47 = vmul.f32 %v2413_v37, %v874_v46 }
0x12dd   :  { %v878_v48 = vrot.slane %v876_v47, 4 }
0x12df   :  { %879 = vrot.lane.b32.xlu1 %v878_v48, %s2492_s2 }
0x1351   :  { %v880_v50 = vpop.permute.xlu1 %879 }
0x1352   :  { %2146 = vmatmul.mubr.msk.f32.vlgmr.msra.gmra.mrb[10].mxu0 %vm141_vm2, %v880_v50 }
0x1353   :  { %2167 = vmatprep.mubr.msk.f32.mxu0 %vm2490_vm0, %v2489_v4 }
0x1425   :  { %v949_v51 = vpop.f32.mrb[10].mxu0 }
0x1426   :  { %v954_v52 = vrot.slane %v949_v51, 2  ;;  %v2147_v53 = vpop.f32.mrb[11].mxu0 }
0x1428   :  { %v956_v54 = vadd.f32 %v954_v52, %v2662_v49  ;;  %v30_v49 = vld [vmem:[%s2860_s4] sm:$0xff] }
0x1429   :  { %v2704_v3 = vpack.c.bf16 %v31_v1, %v30_v49 }
0x142a   :  { %2416 = vtanh.f32 %v956_v54  ;;  %v1954_v56 = vmul.f32 -1.442695, %v956_v54 }
0x142b   :  { %2301 = vmatpush3.bf16.msra.mxu1 %v2704_v3  ;;  %2307 = vmatpush3.bf16.msra.mxu0 %v2704_v3 }
0x142c   :  { %2418 = vpow2.f32 %v1954_v56  ;;  %2302 = vmatprep.subr.bf16.mxu1 %v2488_v0  ;;  %2308 = vmatprep.subr.bf16.mxu0 %v2488_v0 }
0x142f   :  { %2304 = vmatpush3.bf16.msra.mxu1 %v2710_v6  ;;  %2310 = vmatpush3.bf16.msra.mxu0 %v2710_v6 }
0x1430   :  { %2311 = vmatprep.subr.bf16.mxu1 %v2488_v0  ;;  %2317 = vmatprep.subr.bf16.mxu0 %v2488_v0 }
0x1434   :  { %v2417_v55 = vpop.eup %2416 }
0x1435   :  { %969 = vrot.lane.b32.xlu0 %v2417_v55, %s2491_s19 }
0x1436   :  { %v2419_v57 = vpop.eup %2418 }
0x1437   :  { %v960_v58 = vadd.f32 1.0, %v2419_v57 }
0x1439   :  { %2420 = vrcp.f32 %v960_v58 }
0x1443   :  { %v2421_v59 = vpop.eup %2420 }
0x1444   :  { %v967_v61 = vmul.f32 %v2421_v59, %v965_v60 }
0x14a7   :  { %v970_v19 = vpop.permute.xlu0 %969 }
0x14a8   :  { %v972_v40 = vmul.f32 %v2421_v59, %v970_v19 }
0x14aa   :  { %974 = vrot.lane.b32.xlu1 %v972_v40, %s2492_s2 }
0x151c   :  { %v975_v62 = vpop.permute.xlu1 %974 }
0x151d   :  { %v977_v63 = vadd.f32 %v975_v62, %v967_v61 }
0x151f   :  { %2422 = vtanh.f32 %v977_v63  ;;  %v1069_v22 = vrot.slane %v977_v63, 6 }
0x1529   :  { %v2423_v7 = vpop.eup %2422 }
0x152a   :  { %980 = vrot.lane.b32.xlu0 %v2423_v7, %s2491_s19 }
0x159c   :  { %v981_v8 = vpop.permute.xlu0 %980 }
0x159d   :  { %v983_v10 = vmul.f32 %v2421_v59, %v981_v8 }
0x159f   :  { %v985_v9 = vrot.slane %v983_v10, 6 }
0x15a1   :  { %986 = vrot.lane.b32.xlu1 %v985_v9, %s2492_s2 }
0x1613   :  { %v987_v11 = vpop.permute.xlu1 %986 }
0x1614   :  { %2157 = vmatmul.mubr.msk.f32.vlgmr.msra.gmra.mrb[8].mxu1 %vm141_vm2, %v987_v11 }
0x1615   :  { %2313 = vmatpush3.bf16.msra.mxu1 %v2704_v3  ;;  %2178 = vmatprep.mubr.msk.f32.mxu1 %vm2490_vm0, %v2489_v4 }
0x1616   :  { %2314 = vmatprep.subr.bf16.mxu1 %v2488_v0 }
0x1619   :  { %2316 = vmatpush3.bf16.msra.mxu1 %v2710_v6 }
0x161a   :  { %2323 = vmatprep.subr.bf16.mxu1 %v2488_v0 }
0x16e7   :  { %v1056_v14 = vpop.f32.mrb[8].mxu1 }
0x16e8   :  { %v1060_v17 = vadd.f32 %v1056_v14, %v2734_v15  ;;  %v2158_v20 = vpop.f32.mrb[9].mxu1 }
0x16ea   :  { %2424 = vtanh.f32 %v1060_v17  ;;  %v1956_v24 = vmul.f32 -1.442695, %v1060_v17 }
0x16ec   :  { %2426 = vpow2.f32 %v1956_v24 }
0x16f4   :  { %v2425_v23 = vpop.eup %2424 }
0x16f5   :  { %1073 = vrot.lane.b32.xlu0 %v2425_v23, %s2491_s19 }
0x16f6   :  { %v2427_v25 = vpop.eup %2426 }
0x16f7   :  { %v1064_v26 = vadd.f32 1.0, %v2427_v25 }
0x16f9   :  { %2428 = vrcp.f32 %v1064_v26 }
0x1703   :  { %v2429_v16 = vpop.eup %2428 }
0x1704   :  { %v1071_v28 = vmul.f32 %v2429_v16, %v1069_v22 }
0x1767   :  { %v1074_v18 = vpop.permute.xlu0 %1073 }
0x1768   :  { %v1076_v27 = vmul.f32 %v2429_v16, %v1074_v18 }
0x176a   :  { %1078 = vrot.lane.b32.xlu1 %v1076_v27, %s2492_s2 }
0x17dc   :  { %v1079_v29 = vpop.permute.xlu1 %1078 }
0x17dd   :  { %v1081_v30 = vadd.f32 %v1079_v29, %v1071_v28 }
0x17df   :  { %2430 = vtanh.f32 %v1081_v30  ;;  %v1175_v47 = vrot.slane %v1081_v30, 6 }
0x17e9   :  { %v2431_v31 = vpop.eup %2430 }
0x17ea   :  { %1084 = vrot.lane.b32.xlu0 %v2431_v31, %s2491_s19 }
0x185c   :  { %v1085_v32 = vpop.permute.xlu0 %1084 }
0x185d   :  { %v2740_v33 = vmul.f32 %v2429_v16, %v1085_v32 }
0x185f   :  { %1089 = vrot.lane.b32.xlu1 %v2740_v33, %s2492_s2 }
0x18d1   :  { %v1090_v34 = vpop.permute.xlu1 %1089 }
0x18d2   :  { %2168 = vmatmul.mubr.msk.f32.vlgmr.msra.gmra.mrb[12].mxu0 %vm141_vm2, %v1090_v34 }
0x18d3   :  { %2319 = vmatpush3.bf16.msra.mxu0 %v2704_v3  ;;  %2189 = vmatprep.mubr.msk.f32.mxu0 %vm2490_vm0, %v2489_v4 }
0x18d4   :  { %2320 = vmatprep.subr.bf16.mxu0 %v2488_v0 }
0x18d7   :  { %2322 = vmatpush3.bf16.msra.mxu0 %v2710_v6 }
0x18d8   :  { %2329 = vmatprep.subr.bf16.mxu0 %v2488_v0 }
0x19a5   :  { %v1159_v35 = vpop.f32.mrb[12].mxu0 }
0x19a6   :  { %v1164_v36 = vrot.slane %v1159_v35, 6  ;;  %v2169_v37 = vpop.f32.mrb[13].mxu0 }
0x19a8   :  { %v1166_v38 = vadd.f32 %v1164_v36, %v2734_v15 }
0x19aa   :  { %2432 = vtanh.f32 %v1166_v38  ;;  %v1958_v42 = vmul.f32 -1.442695, %v1166_v38 }
0x19ac   :  { %2434 = vpow2.f32 %v1958_v42  ;;  %v2794_v42 = vadd.f32 %v2615_v41, %v2730_v13 }
0x19b4   :  { %v2433_v39 = vpop.eup %2432 }
0x19b5   :  { %1179 = vrot.lane.b32.xlu0 %v2433_v39, %s2491_s19 }
0x19b6   :  { %v2435_v43 = vpop.eup %2434 }
0x19b7   :  { %v1170_v44 = vadd.f32 1.0, %v2435_v43 }
0x19b9   :  { %2436 = vrcp.f32 %v1170_v44 }
0x19c3   :  { %v2437_v21 = vpop.eup %2436 }
0x19c4   :  { %v1177_v48 = vmul.f32 %v2437_v21, %v1175_v47 }
0x1a27   :  { %v1180_v45 = vpop.permute.xlu0 %1179 }
0x1a28   :  { %v1182_v46 = vmul.f32 %v2437_v21, %v1180_v45 }
0x1a2a   :  { %1184 = vrot.lane.b32.xlu1 %v1182_v46, %s2492_s2 }
0x1a9c   :  { %v1185_v50 = vpop.permute.xlu1 %1184 }
0x1a9d   :  { %v1187_v51 = vadd.f32 %v1185_v50, %v1177_v48 }
0x1a9f   :  { %2438 = vtanh.f32 %v1187_v51  ;;  %v1282_v2 = vrot.slane %v1187_v51, 6 }
0x1aa9   :  { %v2439_v52 = vpop.eup %2438 }
0x1aaa   :  { %1190 = vrot.lane.b32.xlu0 %v2439_v52, %s2491_s19 }
0x1b1c   :  { %v1191_v53 = vpop.permute.xlu0 %1190 }
0x1b1d   :  { %v1193_v54 = vmul.f32 %v2437_v21, %v1191_v53 }
0x1b1f   :  { %v1195_v55 = vrot.slane %v1193_v54, 2  ;;  %v1833_v12 = vsel %vm1832_vm3, %v2740_v33, %v1193_v54 }
0x1b21   :  { %1196 = vrot.lane.b32.xlu1 %v1195_v55, %s2492_s2 }
0x1b93   :  { %v1197_v56 = vpop.permute.xlu1 %1196 }
0x1b94   :  { %2179 = vmatmul.mubr.msk.f32.vlgmr.msra.gmra.mrb[10].mxu1 %vm141_vm2, %v1197_v56 }
0x1b95   :  { %2325 = vmatpush3.bf16.msra.mxu1 %v2704_v3  ;;  %2200 = vmatprep.mubr.msk.f32.mxu1 %vm2490_vm0, %v2489_v4 }
0x1b96   :  { %2326 = vmatprep.subr.bf16.mxu1 %v2488_v0 }
0x1b99   :  { %2328 = vmatpush3.bf16.msra.mxu1 %v2710_v6 }
0x1b9a   :  { %2335 = vmatprep.subr.bf16.mxu1 %v2488_v0 }
0x1c67   :  { %v1266_v57 = vpop.f32.mrb[10].mxu1 }
0x1c68   :  { %v1271_v58 = vrot.slane %v1266_v57, 4  ;;  %v2180_v59 = vpop.f32.mrb[11].mxu1 }
0x1c6a   :  { %v1273_v19 = vadd.f32 %v1271_v58, %v2734_v15 }
0x1c6c   :  { %2440 = vtanh.f32 %v1273_v19  ;;  %v1960_v60 = vmul.f32 -1.442695, %v1273_v19 }
0x1c6e   :  { %2442 = vpow2.f32 %v1960_v60 }
0x1c76   :  { %v2441_v40 = vpop.eup %2440 }
0x1c77   :  { %1286 = vrot.lane.b32.xlu0 %v2441_v40, %s2491_s19 }
0x1c78   :  { %v2443_v61 = vpop.eup %2442 }
0x1c79   :  { %v1277_v62 = vadd.f32 1.0, %v2443_v61 }
0x1c7b   :  { %2444 = vrcp.f32 %v1277_v62 }
0x1c85   :  { %v2445_v63 = vpop.eup %2444 }
0x1c86   :  { %v1284_v5 = vmul.f32 %v2445_v63, %v1282_v2 }
0x1ce9   :  { %v1287_v49 = vpop.permute.xlu0 %1286 }
0x1cea   :  { %v1289_v1 = vmul.f32 %v2445_v63, %v1287_v49 }
0x1cec   :  { %1291 = vrot.lane.b32.xlu1 %v1289_v1, %s2492_s2 }
0x1d5e   :  { %v1292_v7 = vpop.permute.xlu1 %1291 }
0x1d5f   :  { %v1294_v8 = vadd.f32 %v1292_v7, %v1284_v5 }
0x1d61   :  { %2446 = vtanh.f32 %v1294_v8  ;;  %v1389_v31 = vrot.slane %v1294_v8, 6 }
0x1d6b   :  { %v2447_v10 = vpop.eup %2446 }
0x1d6c   :  { %1297 = vrot.lane.b32.xlu0 %v2447_v10, %s2491_s19 }
0x1dde   :  { %v1298_v9 = vpop.permute.xlu0 %1297 }
0x1ddf   :  { %v1300_v11 = vmul.f32 %v2445_v63, %v1298_v9 }
0x1de1   :  { %v1302_v14 = vrot.slane %v1300_v11, 4  ;;  %v1835_v17 = vsel %vm1834_vm4, %v1833_v12, %v1300_v11 }
0x1de3   :  { %1303 = vrot.lane.b32.xlu1 %v1302_v14, %s2492_s2 }
0x1e55   :  { %v1304_v20 = vpop.permute.xlu1 %1303 }
0x1e56   :  { %2190 = vmatmul.mubr.msk.f32.vlgmr.msra.gmra.mrb[14].mxu0 %vm141_vm2, %v1304_v20 }
0x1e57   :  { %2331 = vmatpush3.bf16.msra.mxu0 %v2704_v3  ;;  %2211 = vmatprep.mubr.msk.f32.mxu0 %vm2490_vm0, %v2489_v4 }
0x1e58   :  { %2332 = vmatprep.subr.bf16.mxu0 %v2488_v0 }
0x1e5b   :  { %2334 = vmatpush3.bf16.msra.mxu0 %v2710_v6 }
0x1e5c   :  { %2341 = vmatprep.subr.bf16.mxu0 %v2488_v0 }
0x1f29   :  { %v1373_v23 = vpop.f32.mrb[14].mxu0 }
0x1f2a   :  { %v1378_v24 = vrot.slane %v1373_v23, 2  ;;  %v2191_v25 = vpop.f32.mrb[15].mxu0 }
0x1f2c   :  { %v1380_v26 = vadd.f32 %v1378_v24, %v2734_v15 }
0x1f2e   :  { %2448 = vtanh.f32 %v1380_v26  ;;  %v1962_v18 = vmul.f32 -1.442695, %v1380_v26 }
0x1f30   :  { %2450 = vpow2.f32 %v1962_v18 }
0x1f38   :  { %v2449_v16 = vpop.eup %2448 }
0x1f39   :  { %1393 = vrot.lane.b32.xlu0 %v2449_v16, %s2491_s19 }
0x1f3a   :  { %v2451_v27 = vpop.eup %2450 }
0x1f3b   :  { %v1384_v22 = vadd.f32 1.0, %v2451_v27 }
0x1f3d   :  { %2452 = vrcp.f32 %v1384_v22 }
0x1f47   :  { %v2453_v28 = vpop.eup %2452 }
0x1f48   :  { %v1391_v32 = vmul.f32 %v2453_v28, %v1389_v31 }
0x1fab   :  { %v1394_v29 = vpop.permute.xlu0 %1393 }
0x1fac   :  { %v1396_v30 = vmul.f32 %v2453_v28, %v1394_v29 }
0x1fae   :  { %1398 = vrot.lane.b32.xlu1 %v1396_v30, %s2492_s2 }
0x2020   :  { %v1399_v33 = vpop.permute.xlu1 %1398 }
0x2021   :  { %v1401_v34 = vadd.f32 %v1399_v33, %v1391_v32 }
0x2023   :  { %2454 = vtanh.f32 %v1401_v34  ;;  %v1493_v41 = vrot.slane %v1401_v34, 6 }
0x202d   :  { %v2455_v15 = vpop.eup %2454 }
0x202e   :  { %1404 = vrot.lane.b32.xlu0 %v2455_v15, %s2491_s19 }
0x20a0   :  { %v1405_v35 = vpop.permute.xlu0 %1404 }
0x20a1   :  { %v1407_v36 = vmul.f32 %v2453_v28, %v1405_v35 }
0x20a3   :  { %v1409_v37 = vrot.slane %v1407_v36, 6  ;;  %v2783_v38 = vsel %vm1836_vm5, %v1835_v17, %v1407_v36 }
0x20a5   :  { %1410 = vrot.lane.b32.xlu1 %v1409_v37, %s2492_s2 }
0x2117   :  { %v1411_v39 = vpop.permute.xlu1 %1410 }
0x2118   :  { %2201 = vmatmul.mubr.msk.f32.vlgmr.msra.gmra.mrb[12].mxu1 %vm141_vm2, %v1411_v39 }
0x2119   :  { %2337 = vmatpush3.bf16.msra.mxu1 %v2704_v3  ;;  %2222 = vmatprep.mubr.msk.f32.mxu1 %vm2490_vm0, %v2489_v4 }
0x211a   :  { %2338 = vmatprep.subr.bf16.mxu1 %v2488_v0 }
0x211d   :  { %2340 = vmatpush3.bf16.msra.mxu1 %v2710_v6 }
0x21eb   :  { %v1480_v43 = vpop.f32.mrb[12].mxu1 }
0x21ec   :  { %v1484_v44 = vadd.f32 %v1480_v43, %v2794_v42  ;;  %v2202_v21 = vpop.f32.mrb[13].mxu1 }
0x21ee   :  { %2456 = vtanh.f32 %v1484_v44  ;;  %v1964_v46 = vmul.f32 -1.442695, %v1484_v44 }
0x21f0   :  { %2458 = vpow2.f32 %v1964_v46 }
0x21f8   :  { %v2457_v45 = vpop.eup %2456 }
0x21f9   :  { %1497 = vrot.lane.b32.xlu0 %v2457_v45, %s2491_s19 }
0x21fa   :  { %v2459_v47 = vpop.eup %2458 }
0x21fb   :  { %v1488_v48 = vadd.f32 1.0, %v2459_v47 }
0x21fd   :  { %2460 = vrcp.f32 %v1488_v48 }
0x2207   :  { %v2461_v50 = vpop.eup %2460 }
0x2208   :  { %v1495_v13 = vmul.f32 %v2461_v50, %v1493_v41 }
0x226b   :  { %v1498_v51 = vpop.permute.xlu0 %1497 }
0x226c   :  { %v1500_v52 = vmul.f32 %v2461_v50, %v1498_v51 }
0x226e   :  { %1502 = vrot.lane.b32.xlu1 %v1500_v52, %s2492_s2 }
0x22e0   :  { %v1503_v53 = vpop.permute.xlu1 %1502 }
0x22e1   :  { %v1505_v54 = vadd.f32 %v1503_v53, %v1495_v13 }
0x22e3   :  { %2462 = vtanh.f32 %v1505_v54 }
0x22ed   :  { %v2463_v55 = vpop.eup %2462 }
0x22ee   :  { %1508 = vrot.lane.b32.xlu0 %v2463_v55, %s2491_s19  ;;  %v35_v55 = vld [vmem:[%s2861_s5 + $0x8] sm:$0xff] }
0x2360   :  { %v1509_v56 = vpop.permute.xlu0 %1508 }
0x2361   :  { %v2800_v57 = vmul.f32 %v2461_v50, %v1509_v56 }
0x2363   :  { %1513 = vrot.lane.b32.xlu1 %v2800_v57, %s2492_s2 }
0x23d5   :  { %v1514_v58 = vpop.permute.xlu1 %1513 }
0x23d6   :  { %2212 = vmatmul.mubr.msk.f32.vlgmr.msra.gmra.mrb[16].mxu0 %vm141_vm2, %v1514_v58 }
0x23d7   :  { %2343 = vmatpush3.bf16.msra.mxu0 %v2704_v3  ;;  %2233 = vmatprep.mubr.msk.f32.mxu0 %vm2490_vm0, %v2489_v4 }
0x23d8   :  { %2344 = vmatprep.subr.bf16.mxu0 %v2488_v0  ;;  %v1599_v0 = vrot.slane %v1505_v54, 6  ;;  %v34_v54 = vld [vmem:[%s2861_s5] sm:$0xff] }
0x23d9   :  { %v2347_v56 = vpack.c.bf16 %v35_v55, %v34_v54 }
0x23db   :  { %2346 = vmatpush3.bf16.msra.mxu0 %v2710_v6  ;;  %2348 = vmatprep.subr.bf16.mxu1 %v2347_v56 }
0x24a9   :  { %v1583_v59 = vpop.f32.mrb[16].mxu0 }
0x24aa   :  { %v1588_v19 = vrot.slane %v1583_v59, 6  ;;  %v2213_v40 = vpop.f32.mrb[17].mxu0 }
0x24ac   :  { %v1590_v60 = vadd.f32 %v1588_v19, %v2794_v42 }
0x24ae   :  { %2464 = vtanh.f32 %v1590_v60  ;;  %v1966_v62 = vmul.f32 -1.442695, %v1590_v60 }
0x24b0   :  { %2466 = vpow2.f32 %v1966_v62  ;;  %v1971_v62 = vld [vmem:[%s2862_s6] ss:$0 sm:$0xff] }
0x24b8   :  { %v2465_v61 = vpop.eup %2464 }
0x24b9   :  { %1603 = vrot.lane.b32.xlu0 %v2465_v61, %s2491_s19 }
0x24ba   :  { %v2467_v63 = vpop.eup %2466 }
0x24bb   :  { %v1594_v3 = vadd.f32 1.0, %v2467_v63 }
0x24bd   :  { %2468 = vrcp.f32 %v1594_v3 }
0x24c7   :  { %v2469_v49 = vpop.eup %2468 }
0x24c8   :  { %v1601_v6 = vmul.f32 %v2469_v49, %v1599_v0 }
0x252b   :  { %v1604_v4 = vpop.permute.xlu0 %1603 }
0x252c   :  { %v1606_v1 = vmul.f32 %v2469_v49, %v1604_v4 }
0x252e   :  { %1608 = vrot.lane.b32.xlu1 %v1606_v1, %s2492_s2 }
0x25a0   :  { %v1609_v2 = vpop.permute.xlu1 %1608 }
0x25a1   :  { %v1611_v5 = vadd.f32 %v1609_v2, %v1601_v6 }
0x25a3   :  { %2470 = vtanh.f32 %v1611_v5  ;;  %v1706_v22 = vrot.slane %v1611_v5, 6 }
0x25ad   :  { %v2471_v7 = vpop.eup %2470 }
0x25ae   :  { %1614 = vrot.lane.b32.xlu0 %v2471_v7, %s2491_s19 }
0x2620   :  { %v1615_v8 = vpop.permute.xlu0 %1614 }
0x2621   :  { %v1617_v10 = vmul.f32 %v2469_v49, %v1615_v8 }
0x2623   :  { %v1619_v9 = vrot.slane %v1617_v10, 2  ;;  %v1838_v34 = vsel %vm1832_vm3, %v2800_v57, %v1617_v10  ;;  %v37_v57 = vld [vmem:[%s2861_s5 + $0x18] sm:$0xff] }
0x2625   :  { %1620 = vrot.lane.b32.xlu1 %v1619_v9, %s2492_s2 }
0x2697   :  { %v1621_v11 = vpop.permute.xlu1 %1620 }
0x2698   :  { %2223 = vmatmul.mubr.msk.f32.vlgmr.msra.gmra.mrb[14].mxu1 %vm141_vm2, %v1621_v11 }
0x2699   :  { %2350 = vmatpush3.bf16.msra.mxu1 %v2347_v56 }
0x276b   :  { %v1690_v12 = vpop.f32.mrb[14].mxu1 }
0x276c   :  { %v1695_v14 = vrot.slane %v1690_v12, 4  ;;  %v2224_v17 = vpop.f32.mrb[15].mxu1 }
0x276e   :  { %v1697_v20 = vadd.f32 %v1695_v14, %v2794_v42 }
0x2770   :  { %2472 = vtanh.f32 %v1697_v20  ;;  %v1968_v24 = vmul.f32 -1.442695, %v1697_v20 }
0x2772   :  { %2474 = vpow2.f32 %v1968_v24 }
0x277a   :  { %v2473_v23 = vpop.eup %2472 }
0x277b   :  { %1710 = vrot.lane.b32.xlu0 %v2473_v23, %s2491_s19 }
0x277c   :  { %v2475_v25 = vpop.eup %2474 }
0x277d   :  { %v1701_v26 = vadd.f32 1.0, %v2475_v25 }
0x277f   :  { %2476 = vrcp.f32 %v1701_v26 }
0x2789   :  { %v2477_v16 = vpop.eup %2476 }
0x278a   :  { %v1708_v28 = vmul.f32 %v2477_v16, %v1706_v22 }
0x27ed   :  { %v1711_v18 = vpop.permute.xlu0 %1710 }
0x27ee   :  { %v1713_v27 = vmul.f32 %v2477_v16, %v1711_v18 }
0x27f0   :  { %1715 = vrot.lane.b32.xlu1 %v1713_v27, %s2492_s2 }
0x2862   :  { %v1716_v29 = vpop.permute.xlu1 %1715 }
0x2863   :  { %v1718_v30 = vadd.f32 %v1716_v29, %v1708_v28 }
0x2865   :  { %2478 = vtanh.f32 %v1718_v30  ;;  %v1813_v52 = vrot.slane %v1718_v30, 6 }
0x286f   :  { %v2479_v31 = vpop.eup %2478 }
0x2870   :  { %1721 = vrot.lane.b32.xlu0 %v2479_v31, %s2491_s19 }
0x28e2   :  { %v1722_v32 = vpop.permute.xlu0 %1721 }
0x28e3   :  { %v1724_v33 = vmul.f32 %v2477_v16, %v1722_v32 }
0x28e5   :  { %v1726_v15 = vrot.slane %v1724_v33, 4  ;;  %v1839_v35 = vsel %vm1834_vm4, %v1838_v34, %v1724_v33 }
0x28e7   :  { %1727 = vrot.lane.b32.xlu1 %v1726_v15, %s2492_s2 }
0x2959   :  { %v1728_v36 = vpop.permute.xlu1 %1727 }
0x295a   :  { %2234 = vmatmul.mubr.msk.f32.vlgmr.msra.gmra.mrb[18].mxu0 %vm141_vm2, %v1728_v36 }
0x2a2d   :  { %v1797_v37 = vpop.f32.mrb[18].mxu0 }
0x2a2e   :  { %v1802_v39 = vrot.slane %v1797_v37, 2  ;;  %v2235_v43 = vpop.f32.mrb[19].mxu0 }
0x2a30   :  { %v1804_v44 = vadd.f32 %v1802_v39, %v2794_v42 }
0x2a32   :  { %2480 = vtanh.f32 %v1804_v44  ;;  %v1970_v45 = vmul.f32 -1.442695, %v1804_v44 }
0x2a34   :  { %2482 = vpow2.f32 %v1970_v45 }
0x2a3c   :  { %v2481_v21 = vpop.eup %2480 }
0x2a3d   :  { %1817 = vrot.lane.b32.xlu0 %v2481_v21, %s2491_s19 }
0x2a3e   :  { %v2483_v46 = vpop.eup %2482 }
0x2a3f   :  { %v1808_v47 = vadd.f32 1.0, %v2483_v46 }
0x2a41   :  { %2484 = vrcp.f32 %v1808_v47 }
0x2a4b   :  { %v2485_v48 = vpop.eup %2484 }
0x2a4c   :  { %v1815_v41 = vmul.f32 %v2485_v48, %v1813_v52 }
0x2aaf   :  { %v1818_v50 = vpop.permute.xlu0 %1817 }
0x2ab0   :  { %v1820_v51 = vmul.f32 %v2485_v48, %v1818_v50 }
0x2ab2   :  { %1822 = vrot.lane.b32.xlu1 %v1820_v51, %s2492_s2 }
0x2ab6   :  { %1849 = vrot.lane.b32.xlu1 %v2783_v38, %s2492_s2  ;;  %v36_v38 = vld [vmem:[%s2861_s5 + $0x10] sm:$0xff] }
0x2ab7   :  { %v2351_v58 = vpack.c.bf16 %v37_v57, %v36_v38 }
0x2ab9   :  { %2352 = vmatprep.subr.bf16.mxu1 %v2351_v58 }
0x2aba   :  { %2354 = vmatpush3.bf16.msra.mxu1 %v2351_v58 }
0x2b24   :  { %v1823_v42 = vpop.permute.xlu1 %1822 }
0x2b25   :  { %v1825_v13 = vadd.f32 %v1823_v42, %v1815_v41 }
0x2b27   :  { %2486 = vtanh.f32 %v1825_v13 }
0x2b28   :  { %v1850_v53 = vpop.permute.xlu1 %1849 }
0x2b29   :  { %2244 = vmatprep.mubr.msk.f32.mxu1 %vm141_vm2, %v1850_v53 }
0x2b31   :  { %v2487_v59 = vpop.eup %2486 }
0x2b32   :  { %1828 = vrot.lane.b32.xlu0 %v2487_v59, %s2491_s19 }
0x2ba4   :  { %v1829_v19 = vpop.permute.xlu0 %1828 }
0x2ba5   :  { %v1831_v40 = vmul.f32 %v2485_v48, %v1829_v19 }
0x2ba7   :  { %v1840_v60 = vsel %vm1836_vm5, %v1839_v35, %v1831_v40 }
0x2ba8   :  { %1851 = vrot.lane.b32.xlu0 %v1840_v60, %s2492_s2 }
0x2c1a   :  { %v1852_v61 = vpop.permute.xlu0 %1851 }
0x2c1b   :  { %2245 = vmatmul.mubr.msk.f32.vlgmr.msra.gmra.mrb[16].mxu1 %vm141_vm2, %v1852_v61 }
0x2cee   :  { %v2246_v63 = vpop.f32.mrb[16].mxu1 }
0x2cef   :  { %v1929_v3 = vadd.f32 %v2246_v63, %v1971_v62  ;;  %v1923_v49 = vpop.f32.mrb[17].mxu1 }
0x2cf0   :  { %v1924_v4 = vadd.f32 %v1971_v62, %v1923_v49 }
0x2cf1   :  { %1933 = vst [vmem:[%s2863_s7 + $0x8] sm:$0xff] %v1929_v3 }
0x2cf2   :  { %1932 = vst [vmem:[%s2863_s7] sm:$0xff] %v1924_v4 }

</bundles_post_ra>
